<compile_context>
chip_gen: v6e
topology: v6e:2x2x1
jax: 0.10.0
libtpu: 0.0.40
codegen_flags: <defaults>
</compile_context>

<pallas_src>
import functools
import math

import jax
import jax.numpy as jnp
from jax.experimental import pallas as pl
from jax.experimental.pallas import tpu as pltpu


_NEG_INF = -1e9  # large-but-finite: padded rows never hit (-inf)-(-inf) -> NaN


# ----------------------------- kernel helpers ------------------------------

def _layer_norm(x, w, b, eps=1e-5):
    mu = jnp.mean(x, axis=-1, keepdims=True)
    var = jnp.mean(jnp.square(x - mu), axis=-1, keepdims=True)
    return (x - mu) * jax.lax.rsqrt(var + eps) * w + b


# ------------------------------ Pallas kernel ------------------------------
# One ResidualAttentionBlock per grid step (batch_tile, layer). The (B, L, D) activation
# lives in x_scratch (fp32 VMEM) across the whole layer axis; the current layer's weights
# are streamed as bf16 blocks (double-buffered by the pipeline).

def transformer_kernel(n_head, has_mask, *refs):
    if has_mask:
        x_ref, mask_ref = refs[0], refs[1]
        p_refs = refs[2:-3]
    else:
        x_ref, mask_ref = refs[0], None
        p_refs = refs[1:-3]
    o_ref, x_scratch, attn_buf = refs[-3], refs[-2], refs[-1]
    (ln1_w_ref, ln1_b_ref, w_in_ref, b_in_ref, w_out_ref, b_out_ref,
     ln2_w_ref, ln2_b_ref, w_fc_ref, b_fc_ref, w_proj_ref, b_proj_ref) = p_refs

    layer = pl.program_id(1)
    B, L, D = x_scratch.shape
    M = B * L
    dh = D // n_head
    scale = 1.0 / math.sqrt(dh)

    @pl.when(layer == 0)
    def _():
        x_scratch[...] = x_ref[...].astype(jnp.float32)

    x2 = x_scratch[...].reshape(M, D)                                    # (M, D) fp32

    # -------- attention branch: x + out_proj(MHA(ln_1(x))) -------------------
    xn = _layer_norm(x2, ln1_w_ref[0], ln1_b_ref[0])
    qkv = jnp.dot(xn.astype(jnp.bfloat16), w_in_ref[0],
                  preferred_element_type=jnp.float32) + b_in_ref[0]      # (M, 3D) f32
    qkv = qkv.reshape(B, L, 3 * D)
    q = (qkv[:, :, 0:D] * scale).astype(jnp.bfloat16)    # torch scales q by 1/sqrt(dh)
    k = qkv[:, :, D:2 * D].astype(jnp.bfloat16)
    v = qkv[:, :, 2 * D:3 * D].astype(jnp.bfloat16)
    mask = mask_ref[...] if has_mask else None           # (L, L) fp32 additive mask

    # TODO(synk): at production head counts (12-16, dh=64) process heads in 128-lane
    # pairs inside a lax.fori_loop(unroll=2) so slices are lane-aligned and live ranges
    # stay bounded.
    for h in range(n_head):                              # per-head scores / softmax only
        sl = slice(h * dh, (h + 1) * dh)
        s = jnp.einsum('bqd,bkd->bqk', q[:, :, sl], k[:, :, sl],
                       preferred_element_type=jnp.float32)               # (B, L, L) f32
        if has_mask:
            s = s + mask
        s = s - jnp.max(s, axis=-1, keepdims=True)
        p = jnp.exp(s)                                                   # unnormalized
        inv = pl.reciprocal(jnp.sum(p, axis=-1, keepdims=True), approx=True)
        pv = jnp.einsum('bqk,bkd->bqd', p.astype(jnp.bfloat16), v[:, :, sl],
                        preferred_element_type=jnp.float32) * inv        # (B, L, dh) f32
        attn_buf[:, :, sl] = pv.astype(jnp.bfloat16)

    # Single full-width out-projection: (M, D) @ (D, D), K = D contraction.
    attn = jnp.dot(attn_buf[...].reshape(M, D), w_out_ref[0],
                   preferred_element_type=jnp.float32) + b_out_ref[0]    # (M, D) f32
    x2 = x2 + attn

    # -------- MLP branch: x + c_proj(QuickGELU(c_fc(ln_2(x)))) ---------------
    xn2 = _layer_norm(x2, ln2_w_ref[0], ln2_b_ref[0])
    h1 = (jnp.dot(xn2.astype(jnp.bfloat16), w_fc_ref[0],
                  preferred_element_type=jnp.float32) + b_fc_ref[0]).astype(jnp.bfloat16)
    h1 = h1 * jax.nn.sigmoid(1.702 * h1)                 # QuickGELU in bf16 (v6e/v7x EUP)
    h2 = jnp.dot(h1, w_proj_ref[0],
                 preferred_element_type=jnp.float32) + b_proj_ref[0]     # (M, D) f32
    x2 = x2 + h2

    x_scratch[...] = x2.reshape(B, L, D)

    @pl.when(layer == pl.num_programs(1) - 1)
    def _():
        o_ref[...] = x2.reshape(B, L, D)


# ------------------------------ wrapper ------------------------------------

_PARAM_ORDER = ("ln1_w", "ln1_b", "w_in", "b_in", "w_out", "b_out",
                "ln2_w", "ln2_b", "w_fc", "b_fc", "w_proj", "b_proj")


def _pick_vmem_limit_bytes():
    cap = None
    try:
        cap = getattr(pltpu.get_tpu_info(), "vmem_capacity_bytes", None)
    except Exception:
        cap = None
    if not cap:
        cap = 64 * 1024 * 1024            # conservative (v7x per-core VMEM)
    return int(cap * 3 // 4)              # leave headroom for compiler scratch


def _pick_batch_tile(n, max_tile=8):
    """Largest divisor of n (<= max_tile) that still leaves >=2 parallel grid steps."""
    divisors = [d for d in range(1, min(n, max_tile) + 1) if n % d == 0]
    multi = [d for d in divisors if n // d >= 2]     # v7x: 2 TensorCores per chip
    return max(multi) if multi else max(divisors)


def transformer_forward(x_lnd, params, n_head, attn_mask=None):
    """Matches clip.model.Transformer.forward: x is (L, N, D) fp32, output fp32."""
    L0, N, D = x_lnd.shape
    num_layers = params["w_in"].shape[0]
    assert D % n_head == 0

    # Pad seq to a multiple of 8 (sublane granularity) so in-kernel reshapes are clean.
    # TODO(synk): pad to 128/256 at real CLIP sizes (L=197) for full MXU tiles and
    # unmasked lane-dense stores.
    L = ((L0 + 7) // 8) * 8
    pad = L - L0

    # TODO(synk): stream directly from the (L, N, D) layout via an (L, B_tile, D)
    # BlockSpec + in-kernel transpose at the first/last layer to drop this HBM transpose.
    x = jnp.transpose(x_lnd, (1, 0, 2))                           # LND -> NLD
    if pad:
        x = jnp.pad(x, ((0, 0), (0, pad), (0, 0)))
    x = x.astype(jnp.bfloat16)                                    # halve activation read

    mask = None
    if attn_mask is not None:
        mask = attn_mask.astype(jnp.float32)
        if pad:
            mask = jnp.pad(mask, ((0, pad), (0, pad)))
    if pad:
        if mask is None:
            mask = jnp.zeros((L, L), jnp.float32)
        # Real queries must never attend to padded key columns.
        mask = mask + jnp.where(jnp.arange(L) >= L0, _NEG_INF, 0.0)[None, :]
    has_mask = mask is not None

    b_tile = _pick_batch_tile(N)

    inputs = [x]
    in_specs = [pl.BlockSpec((b_tile, L, D), lambda b, l: (b, 0, 0))]
    if has_mask:
        inputs.append(mask)
        in_specs.append(pl.BlockSpec((L, L), lambda b, l: (0, 0)))
    # TODO(synk): for v7x (64 MiB VMEM) at CLIP-L sizes, tile w_fc/w_proj along the 4D
    # hidden dim (pl.ANY + pltpu.emit_pipeline) or split each layer into attention/MLP
    # grid phases so only one branch's weights are double-buffered at a time.
    for name in _PARAM_ORDER:
        p = params[name]                                          # stacked: (layers, ...)
        inputs.append(p)
        in_specs.append(pl.BlockSpec((1,) + p.shape[1:], lambda b, l: (l, 0, 0)))

    kernel = functools.partial(transformer_kernel, n_head, has_mask)

    out = pl.pallas_call(
        kernel,
        out_shape=jax.ShapeDtypeStruct((N, L, D), jnp.float32),
        grid=(N // b_tile, num_layers),
        in_specs=in_specs,
        out_specs=pl.BlockSpec((b_tile, L, D), lambda b, l: (b, 0, 0)),
        scratch_shapes=[pltpu.VMEM((b_tile, L, D), jnp.float32),
                        pltpu.VMEM((b_tile, L, D), jnp.bfloat16)],
        compiler_params=pltpu.CompilerParams(
            dimension_semantics=("parallel", "arbitrary"),
            vmem_limit_bytes=_pick_vmem_limit_bytes()),
    )(*inputs)

    out = jnp.transpose(out, (1, 0, 2))                           # NLD -> LND
    if pad:
        out = out[:L0]
    return out


# --------------------------- parameter init --------------------------------

def init_transformer_params(key, width, layers):
    """Per-layer params stacked along a leading `layers` axis; weights bf16, rest fp32."""
    D = width
    s = 0.02
    stacked = {name: [] for name in _PARAM_ORDER}
    for _ in range(layers):
        keys = jax.random.split(key, 9)
        key = keys[0]
        stacked["ln1_w"].append(jnp.ones((1, D), jnp.float32))
        stacked["ln1_b"].append(jnp.zeros((1, D), jnp.float32))
        # torch stores in_proj_weight as (3D, D); keep transposed (D, 3D) so in-kernel
        # matmuls are plain x @ W.
        stacked["w_in"].append((s * jax.random.normal(keys[1], (3 * D, D))).T.astype(jnp.bfloat16))
        stacked["b_in"].append((s * jax.random.normal(keys[2], (1, 3 * D))).astype(jnp.float32))
        stacked["w_out"].append((s * jax.random.normal(keys[3], (D, D))).T.astype(jnp.bfloat16))
        stacked["b_out"].append((s * jax.random.normal(keys[4], (1, D))).astype(jnp.float32))
        stacked["ln2_w"].append(jnp.ones((1, D), jnp.float32))
        stacked["ln2_b"].append(jnp.zeros((1, D), jnp.float32))
        stacked["w_fc"].append((s * jax.random.normal(keys[5], (4 * D, D))).T.astype(jnp.bfloat16))
        stacked["b_fc"].append((s * jax.random.normal(keys[6], (1, 4 * D))).astype(jnp.float32))
        stacked["w_proj"].append((s * jax.random.normal(keys[7], (D, 4 * D))).T.astype(jnp.bfloat16))
        stacked["b_proj"].append((s * jax.random.normal(keys[8], (1, D))).astype(jnp.float32))
    return {name: jnp.stack(vals, axis=0) for name, vals in stacked.items()}


# --------------------------- pure-JAX reference ------------------------------

def _reference_forward(x_lnd, params, n_head, attn_mask=None):
    """fp32 reference matching the PyTorch module (weights shared with the kernel)."""
    L, N, D = x_lnd.shape
    dh = D // n_head
    scale = 1.0 / math.sqrt(dh)
    x = jnp.transpose(x_lnd, (1, 0, 2)).astype(jnp.float32)      # (N, L, D)
    mask = None if attn_mask is None else attn_mask.astype(jnp.float32)
    for i in range(params["w_in"].shape[0]):
        g = lambda n: params[n][i].astype(jnp.float32)
        xn = _layer_norm(x, g("ln1_w"), g("ln1_b"))
        qkv = xn @ g("w_in") + g("b_in")                         # (N, L, 3D)
        q = (qkv[..., 0:D] * scale).reshape(N, L, n_head, dh).transpose(0, 2, 1, 3)
        k = qkv[..., D:2 * D].reshape(N, L, n_head, dh).transpose(0, 2, 1, 3)
        v = qkv[..., 2 * D:3 * D].reshape(N, L, n_head, dh).transpose(0, 2, 1, 3)
        s = jnp.einsum('nhqd,nhkd->nhqk', q, k)
        if mask is not None:
            s = s + mask
        p = jax.nn.softmax(s, axis=-1)
        attn = jnp.einsum('nhqk,nhkd->nhqd', p, v).transpose(0, 2, 1, 3).reshape(N, L, D)
        x = x + attn @ g("w_out") + g("b_out")
        xn2 = _layer_norm(x, g("ln2_w"), g("ln2_b"))
        h = xn2 @ g("w_fc") + g("b_fc")
        h = h * jax.nn.sigmoid(1.702 * h)
        x = x + h @ g("w_proj") + g("b_proj")
    return jnp.transpose(x, (1, 0, 2))


# ------------------------------- main ---------------------------------------

if __name__ == "__main__":
    width = 32     # d_model
    layers = 2
    heads = 4
    seq = 8
    batch = 4      # -> B_tile = 2, two parallel grid iterations

    key = jax.random.PRNGKey(0)
    k_x, k_p, k_x2 = jax.random.split(key, 3)

    # x in PyTorch's (L, N, E) layout, matching Transformer.forward input.
    x = jax.random.normal(k_x, (seq, batch, width), dtype=jnp.float32)
    params = init_transformer_params(k_p, width, layers)

    # attn_mask=None case (CLIP visual transformer).
    out = jax.block_until_ready(transformer_forward(x, params, heads, attn_mask=None))
    ref = _reference_forward(x, params, heads, attn_mask=None)
    assert out.shape == (seq, batch, width), out.shape
    assert bool(jnp.all(jnp.isfinite(out)))
    assert float(jnp.max(jnp.abs(out - ref))) < 5e-2

    # Causal additive mask (CLIP text transformer) exercises the masked variant.
    causal = jnp.triu(jnp.full((seq, seq), float("-inf"), jnp.float32), k=1)
    out_m = jax.block_until_ready(transformer_forward(x, params, heads, attn_mask=causal))
    ref_m = _reference_forward(x, params, heads, attn_mask=causal)
    assert out_m.shape == (seq, batch, width), out_m.shape
    assert float(jnp.max(jnp.abs(out_m - ref_m))) < 5e-2

    # Ragged sequence length exercises the L-padding + padded-key-masking path.
    seq2 = 6
    x2 = jax.random.normal(k_x2, (seq2, batch, width), dtype=jnp.float32)
    out_p = jax.block_until_ready(transformer_forward(x2, params, heads, attn_mask=None))
    ref_p = _reference_forward(x2, params, heads, attn_mask=None)
    assert out_p.shape == (seq2, batch, width), out_p.shape
    assert float(jnp.max(jnp.abs(out_p - ref_p))) < 5e-2

    print("KERNEL_OK")
</pallas_src>

<mosaic_0001>
module attributes {stable_mosaic.version = 11 : i64} {
  func.func @transformer_kernel(%arg0: i32, %arg1: i32, %arg2: memref<2x8x32xbf16, #tpu.memory_space<vmem>>, %arg3: memref<1x1x32xf32, #tpu.memory_space<vmem>>, %arg4: memref<1x1x32xf32, #tpu.memory_space<vmem>>, %arg5: memref<1x32x96xbf16, #tpu.memory_space<vmem>>, %arg6: memref<1x1x96xf32, #tpu.memory_space<vmem>>, %arg7: memref<1x32x32xbf16, #tpu.memory_space<vmem>>, %arg8: memref<1x1x32xf32, #tpu.memory_space<vmem>>, %arg9: memref<1x1x32xf32, #tpu.memory_space<vmem>>, %arg10: memref<1x1x32xf32, #tpu.memory_space<vmem>>, %arg11: memref<1x32x128xbf16, #tpu.memory_space<vmem>>, %arg12: memref<1x1x128xf32, #tpu.memory_space<vmem>>, %arg13: memref<1x128x32xbf16, #tpu.memory_space<vmem>>, %arg14: memref<1x1x32xf32, #tpu.memory_space<vmem>>, %arg15: memref<2x8x32xf32, #tpu.memory_space<vmem>>, %arg16: memref<2x8x32xf32, #tpu.memory_space<vmem>>, %arg17: memref<2x8x32xbf16, #tpu.memory_space<vmem>>) attributes {dimension_semantics = [#tpu.dimension_semantics<parallel>, #tpu.dimension_semantics<arbitrary>], iteration_bounds = array<i64: 2, 2>, scalar_prefetch = 0 : i64, scratch_operands = 2 : i64, tpu.core_type = #tpu.core_type<tc>, window_params = [{transform_indices = @transform_0, window_bounds = array<i64: 2, 8, 32>}, {transform_indices = @transform_1, window_bounds = array<i64: 1, 1, 32>}, {transform_indices = @transform_2, window_bounds = array<i64: 1, 1, 32>}, {transform_indices = @transform_3, window_bounds = array<i64: 1, 32, 96>}, {transform_indices = @transform_4, window_bounds = array<i64: 1, 1, 96>}, {transform_indices = @transform_5, window_bounds = array<i64: 1, 32, 32>}, {transform_indices = @transform_6, window_bounds = array<i64: 1, 1, 32>}, {transform_indices = @transform_7, window_bounds = array<i64: 1, 1, 32>}, {transform_indices = @transform_8, window_bounds = array<i64: 1, 1, 32>}, {transform_indices = @transform_9, window_bounds = array<i64: 1, 32, 128>}, {transform_indices = @transform_10, window_bounds = array<i64: 1, 1, 128>}, {transform_indices = @transform_11, window_bounds = array<i64: 1, 128, 32>}, {transform_indices = @transform_12, window_bounds = array<i64: 1, 1, 32>}, {transform_indices = @transform_13, window_bounds = array<i64: 2, 8, 32>}]} {
    %c0_i32 = arith.constant 0 : i32
    %0 = arith.cmpi eq, %arg1, %c0_i32 : i32
    %1 = arith.extui %0 : i1 to i32
    %c0_i32_0 = arith.constant 0 : i32
    %2 = arith.cmpi ne, %1, %c0_i32_0 : i32
    scf.if %2 {
      %c0_87 = arith.constant 0 : index
      %c0_88 = arith.constant 0 : index
      %c0_89 = arith.constant 0 : index
      %186 = vector.load %arg2[%c0_87, %c0_88, %c0_89] : memref<2x8x32xbf16, #tpu.memory_space<vmem>>, vector<2x8x32xbf16>
      %187 = arith.extf %186 : vector<2x8x32xbf16> to vector<2x8x32xf32>
      %c0_90 = arith.constant 0 : index
      %c0_91 = arith.constant 0 : index
      %c0_92 = arith.constant 0 : index
      %188 = vector.load %arg16[%c0_90, %c0_91, %c0_92] : memref<2x8x32xf32, #tpu.memory_space<vmem>>, vector<2x8x32xf32>
      tpu.vector_store %arg16[%c0_90, %c0_91, %c0_92], %187 {strides = array<i32>} : memref<2x8x32xf32, #tpu.memory_space<vmem>>, vector<2x8x32xf32>,
    } else {
    }
    %c0 = arith.constant 0 : index
    %c0_1 = arith.constant 0 : index
    %c0_2 = arith.constant 0 : index
    %3 = vector.load %arg16[%c0, %c0_1, %c0_2] : memref<2x8x32xf32, #tpu.memory_space<vmem>>, vector<2x8x32xf32>
    %4 = vector.shape_cast %3 : vector<2x8x32xf32> to vector<16x32xf32>
    %c0_3 = arith.constant 0 : index
    %c0_4 = arith.constant 0 : index
    %c0_5 = arith.constant 0 : index
    %5 = vector.load %arg3[%c0_3, %c0_4, %c0_5] : memref<1x1x32xf32, #tpu.memory_space<vmem>>, vector<1x1x32xf32>
    %6 = vector.shape_cast %5 : vector<1x1x32xf32> to vector<1x32xf32>
    %c0_6 = arith.constant 0 : index
    %c0_7 = arith.constant 0 : index
    %c0_8 = arith.constant 0 : index
    %7 = vector.load %arg4[%c0_6, %c0_7, %c0_8] : memref<1x1x32xf32, #tpu.memory_space<vmem>>, vector<1x1x32xf32>
    %8 = vector.shape_cast %7 : vector<1x1x32xf32> to vector<1x32xf32>
    %cst = arith.constant dense<0.000000e+00> : vector<16xf32>
    %9 = vector.multi_reduction <add>, %4, %cst [1] : vector<16x32xf32> to vector<16xf32>
    %10 = vector.shape_cast %9 : vector<16xf32> to vector<16x1xf32>
    %cst_9 = arith.constant 3.200000e+01 : f32
    %11 = vector.broadcast %cst_9 : f32 to vector<16x1xf32>
    %12 = arith.divf %10, %11 : vector<16x1xf32>
    %13 = vector.broadcast %12 : vector<16x1xf32> to vector<16x32xf32>
    %14 = arith.subf %4, %13 : vector<16x32xf32>
    %15 = arith.mulf %14, %14 : vector<16x32xf32>
    %cst_10 = arith.constant dense<0.000000e+00> : vector<16xf32>
    %16 = vector.multi_reduction <add>, %15, %cst_10 [1] : vector<16x32xf32> to vector<16xf32>
    %17 = vector.shape_cast %16 : vector<16xf32> to vector<16x1xf32>
    %cst_11 = arith.constant 3.200000e+01 : f32
    %18 = vector.broadcast %cst_11 : f32 to vector<16x1xf32>
    %19 = arith.divf %17, %18 : vector<16x1xf32>
    %20 = vector.broadcast %12 : vector<16x1xf32> to vector<16x32xf32>
    %21 = arith.subf %4, %20 : vector<16x32xf32>
    %cst_12 = arith.constant 9.99999974E-6 : f32
    %22 = vector.broadcast %cst_12 : f32 to vector<16x1xf32>
    %23 = arith.addf %19, %22 : vector<16x1xf32>
    %24 = math.rsqrt %23 : vector<16x1xf32>
    %25 = vector.broadcast %24 : vector<16x1xf32> to vector<16x32xf32>
    %26 = arith.mulf %21, %25 : vector<16x32xf32>
    %27 = vector.broadcast %6 : vector<1x32xf32> to vector<16x32xf32>
    %28 = arith.mulf %26, %27 : vector<16x32xf32>
    %29 = vector.broadcast %8 : vector<1x32xf32> to vector<16x32xf32>
    %30 = arith.addf %28, %29 : vector<16x32xf32>
    %31 = arith.truncf %30 : vector<16x32xf32> to vector<16x32xbf16>
    %c0_13 = arith.constant 0 : index
    %c0_14 = arith.constant 0 : index
    %c0_15 = arith.constant 0 : index
    %32 = vector.load %arg5[%c0_13, %c0_14, %c0_15] : memref<1x32x96xbf16, #tpu.memory_space<vmem>>, vector<1x32x96xbf16>
    %33 = vector.shape_cast %32 : vector<1x32x96xbf16> to vector<32x96xbf16>
    %cst_16 = arith.constant dense<0.000000e+00> : vector<16x96xf32>
    %34 = tpu.matmul %31, %33, %cst_16 {dimension_numbers = #tpu.dot_dimension_numbers<[1], [0], [0], [1], [0, 0, 1, 1], [], []>} : vector<16x32xbf16>, vector<32x96xbf16>, vector<16x96xf32> -> vector<16x96xf32>
    %c0_17 = arith.constant 0 : index
    %c0_18 = arith.constant 0 : index
    %c0_19 = arith.constant 0 : index
    %35 = vector.load %arg6[%c0_17, %c0_18, %c0_19] : memref<1x1x96xf32, #tpu.memory_space<vmem>>, vector<1x1x96xf32>
    %36 = vector.shape_cast %35 : vector<1x1x96xf32> to vector<1x96xf32>
    %37 = vector.broadcast %36 : vector<1x96xf32> to vector<16x96xf32>
    %38 = arith.addf %34, %37 : vector<16x96xf32>
    %39 = vector.shape_cast %38 : vector<16x96xf32> to vector<2x8x96xf32>
    %40 = vector.extract_strided_slice %39 {offsets = [0, 0, 0], sizes = [2, 8, 32], strides = [1, 1, 1]} : vector<2x8x96xf32> to vector<2x8x32xf32>
    %cst_20 = arith.constant 0.353553385 : f32
    %41 = vector.broadcast %cst_20 : f32 to vector<2x8x32xf32>
    %42 = arith.mulf %40, %41 : vector<2x8x32xf32>
    %43 = arith.truncf %42 : vector<2x8x32xf32> to vector<2x8x32xbf16>
    %44 = vector.extract_strided_slice %39 {offsets = [0, 0, 32], sizes = [2, 8, 32], strides = [1, 1, 1]} : vector<2x8x96xf32> to vector<2x8x32xf32>
    %45 = arith.truncf %44 : vector<2x8x32xf32> to vector<2x8x32xbf16>
    %46 = vector.extract_strided_slice %39 {offsets = [0, 0, 64], sizes = [2, 8, 32], strides = [1, 1, 1]} : vector<2x8x96xf32> to vector<2x8x32xf32>
    %47 = arith.truncf %46 : vector<2x8x32xf32> to vector<2x8x32xbf16>
    %48 = vector.extract_strided_slice %43 {offsets = [0, 0, 0], sizes = [2, 8, 8], strides = [1, 1, 1]} : vector<2x8x32xbf16> to vector<2x8x8xbf16>
    %49 = vector.extract_strided_slice %45 {offsets = [0, 0, 0], sizes = [2, 8, 8], strides = [1, 1, 1]} : vector<2x8x32xbf16> to vector<2x8x8xbf16>
    "tpu.trace_start"() <{level = 10 : i32, message = "bqd,bkd->bqk"}> : () -> ()
    %cst_21 = arith.constant dense<0.000000e+00> : vector<2x8x8xf32>
    %50 = tpu.matmul %48, %49, %cst_21 {dimension_numbers = #tpu.dot_dimension_numbers<[2], [2], [1], [1], [0, 0, 0, 1, 1, 1], [0], [0]>} : vector<2x8x8xbf16>, vector<2x8x8xbf16>, vector<2x8x8xf32> -> vector<2x8x8xf32>
    "tpu.trace_stop"() : () -> ()
    %cst_22 = arith.constant dense<0xFF800000> : vector<2x8xf32>
    %51 = vector.multi_reduction <maximumf>, %50, %cst_22 [2] : vector<2x8x8xf32> to vector<2x8xf32>
    %52 = vector.shape_cast %51 : vector<2x8xf32> to vector<2x8x1xf32>
    %53 = vector.broadcast %52 : vector<2x8x1xf32> to vector<2x8x8xf32>
    %54 = arith.subf %50, %53 : vector<2x8x8xf32>
    %55 = math.exp %54 : vector<2x8x8xf32>
    %cst_23 = arith.constant dense<0.000000e+00> : vector<2x8xf32>
    %56 = vector.multi_reduction <add>, %55, %cst_23 [2] : vector<2x8x8xf32> to vector<2x8xf32>
    %57 = vector.shape_cast %56 : vector<2x8xf32> to vector<2x8x1xf32>
    %58 = tpu.reciprocal %57 {approx = true} : vector<2x8x1xf32> -> vector<2x8x1xf32>
    %59 = arith.truncf %55 : vector<2x8x8xf32> to vector<2x8x8xbf16>
    %60 = vector.extract_strided_slice %47 {offsets = [0, 0, 0], sizes = [2, 8, 8], strides = [1, 1, 1]} : vector<2x8x32xbf16> to vector<2x8x8xbf16>
    "tpu.trace_start"() <{level = 10 : i32, message = "bqk,bkd->bqd"}> : () -> ()
    %cst_24 = arith.constant dense<0.000000e+00> : vector<2x8x8xf32>
    %61 = tpu.matmul %59, %60, %cst_24 {dimension_numbers = #tpu.dot_dimension_numbers<[2], [1], [1], [2], [0, 0, 0, 1, 1, 2], [0], [0]>} : vector<2x8x8xbf16>, vector<2x8x8xbf16>, vector<2x8x8xf32> -> vector<2x8x8xf32>
    "tpu.trace_stop"() : () -> ()
    %62 = vector.broadcast %58 : vector<2x8x1xf32> to vector<2x8x8xf32>
    %63 = arith.mulf %61, %62 : vector<2x8x8xf32>
    %64 = arith.truncf %63 : vector<2x8x8xf32> to vector<2x8x8xbf16>
    %c0_25 = arith.constant 0 : index
    %c0_26 = arith.constant 0 : index
    %c0_27 = arith.constant 0 : index
    %65 = vector.load %arg17[%c0_25, %c0_26, %c0_27] : memref<2x8x32xbf16, #tpu.memory_space<vmem>>, vector<2x8x8xbf16>
    tpu.vector_store %arg17[%c0_25, %c0_26, %c0_27], %64 {strides = array<i32>} : memref<2x8x32xbf16, #tpu.memory_space<vmem>>, vector<2x8x8xbf16>,
    %66 = vector.extract_strided_slice %43 {offsets = [0, 0, 8], sizes = [2, 8, 8], strides = [1, 1, 1]} : vector<2x8x32xbf16> to vector<2x8x8xbf16>
    %67 = vector.extract_strided_slice %45 {offsets = [0, 0, 8], sizes = [2, 8, 8], strides = [1, 1, 1]} : vector<2x8x32xbf16> to vector<2x8x8xbf16>
    "tpu.trace_start"() <{level = 10 : i32, message = "bqd,bkd->bqk"}> : () -> ()
    %cst_28 = arith.constant dense<0.000000e+00> : vector<2x8x8xf32>
    %68 = tpu.matmul %66, %67, %cst_28 {dimension_numbers = #tpu.dot_dimension_numbers<[2], [2], [1], [1], [0, 0, 0, 1, 1, 1], [0], [0]>} : vector<2x8x8xbf16>, vector<2x8x8xbf16>, vector<2x8x8xf32> -> vector<2x8x8xf32>
    "tpu.trace_stop"() : () -> ()
    %cst_29 = arith.constant dense<0xFF800000> : vector<2x8xf32>
    %69 = vector.multi_reduction <maximumf>, %68, %cst_29 [2] : vector<2x8x8xf32> to vector<2x8xf32>
    %70 = vector.shape_cast %69 : vector<2x8xf32> to vector<2x8x1xf32>
    %71 = vector.broadcast %70 : vector<2x8x1xf32> to vector<2x8x8xf32>
    %72 = arith.subf %68, %71 : vector<2x8x8xf32>
    %73 = math.exp %72 : vector<2x8x8xf32>
    %cst_30 = arith.constant dense<0.000000e+00> : vector<2x8xf32>
    %74 = vector.multi_reduction <add>, %73, %cst_30 [2] : vector<2x8x8xf32> to vector<2x8xf32>
    %75 = vector.shape_cast %74 : vector<2x8xf32> to vector<2x8x1xf32>
    %76 = tpu.reciprocal %75 {approx = true} : vector<2x8x1xf32> -> vector<2x8x1xf32>
    %77 = arith.truncf %73 : vector<2x8x8xf32> to vector<2x8x8xbf16>
    %78 = vector.extract_strided_slice %47 {offsets = [0, 0, 8], sizes = [2, 8, 8], strides = [1, 1, 1]} : vector<2x8x32xbf16> to vector<2x8x8xbf16>
    "tpu.trace_start"() <{level = 10 : i32, message = "bqk,bkd->bqd"}> : () -> ()
    %cst_31 = arith.constant dense<0.000000e+00> : vector<2x8x8xf32>
    %79 = tpu.matmul %77, %78, %cst_31 {dimension_numbers = #tpu.dot_dimension_numbers<[2], [1], [1], [2], [0, 0, 0, 1, 1, 2], [0], [0]>} : vector<2x8x8xbf16>, vector<2x8x8xbf16>, vector<2x8x8xf32> -> vector<2x8x8xf32>
    "tpu.trace_stop"() : () -> ()
    %80 = vector.broadcast %76 : vector<2x8x1xf32> to vector<2x8x8xf32>
    %81 = arith.mulf %79, %80 : vector<2x8x8xf32>
    %82 = arith.truncf %81 : vector<2x8x8xf32> to vector<2x8x8xbf16>
    %c0_32 = arith.constant 0 : index
    %c0_33 = arith.constant 0 : index
    %c8 = arith.constant 8 : index
    %83 = vector.load %arg17[%c0_32, %c0_33, %c8] : memref<2x8x32xbf16, #tpu.memory_space<vmem>>, vector<2x8x8xbf16>
    tpu.vector_store %arg17[%c0_32, %c0_33, %c8], %82 {strides = array<i32>} : memref<2x8x32xbf16, #tpu.memory_space<vmem>>, vector<2x8x8xbf16>,
    %84 = vector.extract_strided_slice %43 {offsets = [0, 0, 16], sizes = [2, 8, 8], strides = [1, 1, 1]} : vector<2x8x32xbf16> to vector<2x8x8xbf16>
    %85 = vector.extract_strided_slice %45 {offsets = [0, 0, 16], sizes = [2, 8, 8], strides = [1, 1, 1]} : vector<2x8x32xbf16> to vector<2x8x8xbf16>
    "tpu.trace_start"() <{level = 10 : i32, message = "bqd,bkd->bqk"}> : () -> ()
    %cst_34 = arith.constant dense<0.000000e+00> : vector<2x8x8xf32>
    %86 = tpu.matmul %84, %85, %cst_34 {dimension_numbers = #tpu.dot_dimension_numbers<[2], [2], [1], [1], [0, 0, 0, 1, 1, 1], [0], [0]>} : vector<2x8x8xbf16>, vector<2x8x8xbf16>, vector<2x8x8xf32> -> vector<2x8x8xf32>
    "tpu.trace_stop"() : () -> ()
    %cst_35 = arith.constant dense<0xFF800000> : vector<2x8xf32>
    %87 = vector.multi_reduction <maximumf>, %86, %cst_35 [2] : vector<2x8x8xf32> to vector<2x8xf32>
    %88 = vector.shape_cast %87 : vector<2x8xf32> to vector<2x8x1xf32>
    %89 = vector.broadcast %88 : vector<2x8x1xf32> to vector<2x8x8xf32>
    %90 = arith.subf %86, %89 : vector<2x8x8xf32>
    %91 = math.exp %90 : vector<2x8x8xf32>
    %cst_36 = arith.constant dense<0.000000e+00> : vector<2x8xf32>
    %92 = vector.multi_reduction <add>, %91, %cst_36 [2] : vector<2x8x8xf32> to vector<2x8xf32>
    %93 = vector.shape_cast %92 : vector<2x8xf32> to vector<2x8x1xf32>
    %94 = tpu.reciprocal %93 {approx = true} : vector<2x8x1xf32> -> vector<2x8x1xf32>
    %95 = arith.truncf %91 : vector<2x8x8xf32> to vector<2x8x8xbf16>
    %96 = vector.extract_strided_slice %47 {offsets = [0, 0, 16], sizes = [2, 8, 8], strides = [1, 1, 1]} : vector<2x8x32xbf16> to vector<2x8x8xbf16>
    "tpu.trace_start"() <{level = 10 : i32, message = "bqk,bkd->bqd"}> : () -> ()
    %cst_37 = arith.constant dense<0.000000e+00> : vector<2x8x8xf32>
    %97 = tpu.matmul %95, %96, %cst_37 {dimension_numbers = #tpu.dot_dimension_numbers<[2], [1], [1], [2], [0, 0, 0, 1, 1, 2], [0], [0]>} : vector<2x8x8xbf16>, vector<2x8x8xbf16>, vector<2x8x8xf32> -> vector<2x8x8xf32>
    "tpu.trace_stop"() : () -> ()
    %98 = vector.broadcast %94 : vector<2x8x1xf32> to vector<2x8x8xf32>
    %99 = arith.mulf %97, %98 : vector<2x8x8xf32>
    %100 = arith.truncf %99 : vector<2x8x8xf32> to vector<2x8x8xbf16>
    %c0_38 = arith.constant 0 : index
    %c0_39 = arith.constant 0 : index
    %c16 = arith.constant 16 : index
    %101 = vector.load %arg17[%c0_38, %c0_39, %c16] : memref<2x8x32xbf16, #tpu.memory_space<vmem>>, vector<2x8x8xbf16>
    tpu.vector_store %arg17[%c0_38, %c0_39, %c16], %100 {strides = array<i32>} : memref<2x8x32xbf16, #tpu.memory_space<vmem>>, vector<2x8x8xbf16>,
    %102 = vector.extract_strided_slice %43 {offsets = [0, 0, 24], sizes = [2, 8, 8], strides = [1, 1, 1]} : vector<2x8x32xbf16> to vector<2x8x8xbf16>
    %103 = vector.extract_strided_slice %45 {offsets = [0, 0, 24], sizes = [2, 8, 8], strides = [1, 1, 1]} : vector<2x8x32xbf16> to vector<2x8x8xbf16>
    "tpu.trace_start"() <{level = 10 : i32, message = "bqd,bkd->bqk"}> : () -> ()
    %cst_40 = arith.constant dense<0.000000e+00> : vector<2x8x8xf32>
    %104 = tpu.matmul %102, %103, %cst_40 {dimension_numbers = #tpu.dot_dimension_numbers<[2], [2], [1], [1], [0, 0, 0, 1, 1, 1], [0], [0]>} : vector<2x8x8xbf16>, vector<2x8x8xbf16>, vector<2x8x8xf32> -> vector<2x8x8xf32>
    "tpu.trace_stop"() : () -> ()
    %cst_41 = arith.constant dense<0xFF800000> : vector<2x8xf32>
    %105 = vector.multi_reduction <maximumf>, %104, %cst_41 [2] : vector<2x8x8xf32> to vector<2x8xf32>
    %106 = vector.shape_cast %105 : vector<2x8xf32> to vector<2x8x1xf32>
    %107 = vector.broadcast %106 : vector<2x8x1xf32> to vector<2x8x8xf32>
    %108 = arith.subf %104, %107 : vector<2x8x8xf32>
    %109 = math.exp %108 : vector<2x8x8xf32>
    %cst_42 = arith.constant dense<0.000000e+00> : vector<2x8xf32>
    %110 = vector.multi_reduction <add>, %109, %cst_42 [2] : vector<2x8x8xf32> to vector<2x8xf32>
    %111 = vector.shape_cast %110 : vector<2x8xf32> to vector<2x8x1xf32>
    %112 = tpu.reciprocal %111 {approx = true} : vector<2x8x1xf32> -> vector<2x8x1xf32>
    %113 = arith.truncf %109 : vector<2x8x8xf32> to vector<2x8x8xbf16>
    %114 = vector.extract_strided_slice %47 {offsets = [0, 0, 24], sizes = [2, 8, 8], strides = [1, 1, 1]} : vector<2x8x32xbf16> to vector<2x8x8xbf16>
    "tpu.trace_start"() <{level = 10 : i32, message = "bqk,bkd->bqd"}> : () -> ()
    %cst_43 = arith.constant dense<0.000000e+00> : vector<2x8x8xf32>
    %115 = tpu.matmul %113, %114, %cst_43 {dimension_numbers = #tpu.dot_dimension_numbers<[2], [1], [1], [2], [0, 0, 0, 1, 1, 2], [0], [0]>} : vector<2x8x8xbf16>, vector<2x8x8xbf16>, vector<2x8x8xf32> -> vector<2x8x8xf32>
    "tpu.trace_stop"() : () -> ()
    %116 = vector.broadcast %112 : vector<2x8x1xf32> to vector<2x8x8xf32>
    %117 = arith.mulf %115, %116 : vector<2x8x8xf32>
    %118 = arith.truncf %117 : vector<2x8x8xf32> to vector<2x8x8xbf16>
    %c0_44 = arith.constant 0 : index
    %c0_45 = arith.constant 0 : index
    %c24 = arith.constant 24 : index
    %119 = vector.load %arg17[%c0_44, %c0_45, %c24] : memref<2x8x32xbf16, #tpu.memory_space<vmem>>, vector<2x8x8xbf16>
    tpu.vector_store %arg17[%c0_44, %c0_45, %c24], %118 {strides = array<i32>} : memref<2x8x32xbf16, #tpu.memory_space<vmem>>, vector<2x8x8xbf16>,
    %c0_46 = arith.constant 0 : index
    %c0_47 = arith.constant 0 : index
    %c0_48 = arith.constant 0 : index
    %120 = vector.load %arg17[%c0_46, %c0_47, %c0_48] : memref<2x8x32xbf16, #tpu.memory_space<vmem>>, vector<2x8x32xbf16>
    %121 = vector.shape_cast %120 : vector<2x8x32xbf16> to vector<16x32xbf16>
    %c0_49 = arith.constant 0 : index
    %c0_50 = arith.constant 0 : index
    %c0_51 = arith.constant 0 : index
    %122 = vector.load %arg7[%c0_49, %c0_50, %c0_51] : memref<1x32x32xbf16, #tpu.memory_space<vmem>>, vector<1x32x32xbf16>
    %123 = vector.shape_cast %122 : vector<1x32x32xbf16> to vector<32x32xbf16>
    %cst_52 = arith.constant dense<0.000000e+00> : vector<16x32xf32>
    %124 = tpu.matmul %121, %123, %cst_52 {dimension_numbers = #tpu.dot_dimension_numbers<[1], [0], [0], [1], [0, 0, 1, 1], [], []>} : vector<16x32xbf16>, vector<32x32xbf16>, vector<16x32xf32> -> vector<16x32xf32>
    %c0_53 = arith.constant 0 : index
    %c0_54 = arith.constant 0 : index
    %c0_55 = arith.constant 0 : index
    %125 = vector.load %arg8[%c0_53, %c0_54, %c0_55] : memref<1x1x32xf32, #tpu.memory_space<vmem>>, vector<1x1x32xf32>
    %126 = vector.shape_cast %125 : vector<1x1x32xf32> to vector<1x32xf32>
    %127 = vector.broadcast %126 : vector<1x32xf32> to vector<16x32xf32>
    %128 = arith.addf %124, %127 : vector<16x32xf32>
    %129 = arith.addf %4, %128 : vector<16x32xf32>
    %c0_56 = arith.constant 0 : index
    %c0_57 = arith.constant 0 : index
    %c0_58 = arith.constant 0 : index
    %130 = vector.load %arg9[%c0_56, %c0_57, %c0_58] : memref<1x1x32xf32, #tpu.memory_space<vmem>>, vector<1x1x32xf32>
    %131 = vector.shape_cast %130 : vector<1x1x32xf32> to vector<1x32xf32>
    %c0_59 = arith.constant 0 : index
    %c0_60 = arith.constant 0 : index
    %c0_61 = arith.constant 0 : index
    %132 = vector.load %arg10[%c0_59, %c0_60, %c0_61] : memref<1x1x32xf32, #tpu.memory_space<vmem>>, vector<1x1x32xf32>
    %133 = vector.shape_cast %132 : vector<1x1x32xf32> to vector<1x32xf32>
    %cst_62 = arith.constant dense<0.000000e+00> : vector<16xf32>
    %134 = vector.multi_reduction <add>, %129, %cst_62 [1] : vector<16x32xf32> to vector<16xf32>
    %135 = vector.shape_cast %134 : vector<16xf32> to vector<16x1xf32>
    %cst_63 = arith.constant 3.200000e+01 : f32
    %136 = vector.broadcast %cst_63 : f32 to vector<16x1xf32>
    %137 = arith.divf %135, %136 : vector<16x1xf32>
    %138 = vector.broadcast %137 : vector<16x1xf32> to vector<16x32xf32>
    %139 = arith.subf %129, %138 : vector<16x32xf32>
    %140 = arith.mulf %139, %139 : vector<16x32xf32>
    %cst_64 = arith.constant dense<0.000000e+00> : vector<16xf32>
    %141 = vector.multi_reduction <add>, %140, %cst_64 [1] : vector<16x32xf32> to vector<16xf32>
    %142 = vector.shape_cast %141 : vector<16xf32> to vector<16x1xf32>
    %cst_65 = arith.constant 3.200000e+01 : f32
    %143 = vector.broadcast %cst_65 : f32 to vector<16x1xf32>
    %144 = arith.divf %142, %143 : vector<16x1xf32>
    %145 = vector.broadcast %137 : vector<16x1xf32> to vector<16x32xf32>
    %146 = arith.subf %129, %145 : vector<16x32xf32>
    %cst_66 = arith.constant 9.99999974E-6 : f32
    %147 = vector.broadcast %cst_66 : f32 to vector<16x1xf32>
    %148 = arith.addf %144, %147 : vector<16x1xf32>
    %149 = math.rsqrt %148 : vector<16x1xf32>
    %150 = vector.broadcast %149 : vector<16x1xf32> to vector<16x32xf32>
    %151 = arith.mulf %146, %150 : vector<16x32xf32>
    %152 = vector.broadcast %131 : vector<1x32xf32> to vector<16x32xf32>
    %153 = arith.mulf %151, %152 : vector<16x32xf32>
    %154 = vector.broadcast %133 : vector<1x32xf32> to vector<16x32xf32>
    %155 = arith.addf %153, %154 : vector<16x32xf32>
    %156 = arith.truncf %155 : vector<16x32xf32> to vector<16x32xbf16>
    %c0_67 = arith.constant 0 : index
    %c0_68 = arith.constant 0 : index
    %c0_69 = arith.constant 0 : index
    %157 = vector.load %arg11[%c0_67, %c0_68, %c0_69] : memref<1x32x128xbf16, #tpu.memory_space<vmem>>, vector<1x32x128xbf16>
    %158 = vector.shape_cast %157 : vector<1x32x128xbf16> to vector<32x128xbf16>
    %cst_70 = arith.constant dense<0.000000e+00> : vector<16x128xf32>
    %159 = tpu.matmul %156, %158, %cst_70 {dimension_numbers = #tpu.dot_dimension_numbers<[1], [0], [0], [1], [0, 0, 1, 1], [], []>} : vector<16x32xbf16>, vector<32x128xbf16>, vector<16x128xf32> -> vector<16x128xf32>
    %c0_71 = arith.constant 0 : index
    %c0_72 = arith.constant 0 : index
    %c0_73 = arith.constant 0 : index
    %160 = vector.load %arg12[%c0_71, %c0_72, %c0_73] : memref<1x1x128xf32, #tpu.memory_space<vmem>>, vector<1x1x128xf32>
    %161 = vector.shape_cast %160 : vector<1x1x128xf32> to vector<1x128xf32>
    %162 = vector.broadcast %161 : vector<1x128xf32> to vector<16x128xf32>
    %163 = arith.addf %159, %162 : vector<16x128xf32>
    %164 = arith.truncf %163 : vector<16x128xf32> to vector<16x128xbf16>
    %cst_74 = arith.constant 1.703130e+00 : bf16
    %165 = vector.broadcast %cst_74 : bf16 to vector<16x128xbf16>
    %166 = arith.mulf %165, %164 : vector<16x128xbf16>
    %167 = arith.negf %166 : vector<16x128xbf16>
    %168 = math.exp %167 : vector<16x128xbf16>
    %cst_75 = arith.constant 1.000000e+00 : bf16
    %169 = vector.broadcast %cst_75 : bf16 to vector<16x128xbf16>
    %170 = arith.addf %169, %168 : vector<16x128xbf16>
    %171 = arith.divf %169, %170 : vector<16x128xbf16>
    %172 = arith.mulf %164, %171 : vector<16x128xbf16>
    %c0_76 = arith.constant 0 : index
    %c0_77 = arith.constant 0 : index
    %c0_78 = arith.constant 0 : index
    %173 = vector.load %arg13[%c0_76, %c0_77, %c0_78] : memref<1x128x32xbf16, #tpu.memory_space<vmem>>, vector<1x128x32xbf16>
    %174 = vector.shape_cast %173 : vector<1x128x32xbf16> to vector<128x32xbf16>
    %cst_79 = arith.constant dense<0.000000e+00> : vector<16x32xf32>
    %175 = tpu.matmul %172, %174, %cst_79 {dimension_numbers = #tpu.dot_dimension_numbers<[1], [0], [0], [1], [0, 0, 1, 1], [], []>} : vector<16x128xbf16>, vector<128x32xbf16>, vector<16x32xf32> -> vector<16x32xf32>
    %c0_80 = arith.constant 0 : index
    %c0_81 = arith.constant 0 : index
    %c0_82 = arith.constant 0 : index
    %176 = vector.load %arg14[%c0_80, %c0_81, %c0_82] : memref<1x1x32xf32, #tpu.memory_space<vmem>>, vector<1x1x32xf32>
    %177 = vector.shape_cast %176 : vector<1x1x32xf32> to vector<1x32xf32>
    %178 = vector.broadcast %177 : vector<1x32xf32> to vector<16x32xf32>
    %179 = arith.addf %175, %178 : vector<16x32xf32>
    %180 = arith.addf %129, %179 : vector<16x32xf32>
    %181 = vector.shape_cast %180 : vector<16x32xf32> to vector<2x8x32xf32>
    %c0_83 = arith.constant 0 : index
    %c0_84 = arith.constant 0 : index
    %c0_85 = arith.constant 0 : index
    %182 = vector.load %arg16[%c0_83, %c0_84, %c0_85] : memref<2x8x32xf32, #tpu.memory_space<vmem>>, vector<2x8x32xf32>
    tpu.vector_store %arg16[%c0_83, %c0_84, %c0_85], %181 {strides = array<i32>} : memref<2x8x32xf32, #tpu.memory_space<vmem>>, vector<2x8x32xf32>,
    %c1_i32 = arith.constant 1 : i32
    %183 = arith.cmpi eq, %arg1, %c1_i32 : i32
    %184 = arith.extui %183 : i1 to i32
    %c0_i32_86 = arith.constant 0 : i32
    %185 = arith.cmpi ne, %184, %c0_i32_86 : i32
    scf.if %185 {
      %186 = vector.shape_cast %180 : vector<16x32xf32> to vector<2x8x32xf32>
      %c0_87 = arith.constant 0 : index
      %c0_88 = arith.constant 0 : index
      %c0_89 = arith.constant 0 : index
      %187 = vector.load %arg15[%c0_87, %c0_88, %c0_89] : memref<2x8x32xf32, #tpu.memory_space<vmem>>, vector<2x8x32xf32>
      tpu.vector_store %arg15[%c0_87, %c0_88, %c0_89], %186 {strides = array<i32>} : memref<2x8x32xf32, #tpu.memory_space<vmem>>, vector<2x8x32xf32>,
    } else {
    }
    return
  }
  func.func @transform_0(%arg0: i32, %arg1: i32) -> (i32, i32, i32) {
    %c0_i32 = arith.constant 0 : i32
    %c0_i32_0 = arith.constant 0 : i32
    %c0_i32_1 = arith.constant 0 : i32
    return %arg0, %c0_i32, %c0_i32_0 : i32, i32, i32
  }
  func.func @transform_1(%arg0: i32, %arg1: i32) -> (i32, i32, i32) {
    %c0_i32 = arith.constant 0 : i32
    %c0_i32_0 = arith.constant 0 : i32
    %c0_i32_1 = arith.constant 0 : i32
    return %arg1, %c0_i32, %c0_i32_0 : i32, i32, i32
  }
  func.func @transform_2(%arg0: i32, %arg1: i32) -> (i32, i32, i32) {
    %c0_i32 = arith.constant 0 : i32
    %c0_i32_0 = arith.constant 0 : i32
    %c0_i32_1 = arith.constant 0 : i32
    return %arg1, %c0_i32, %c0_i32_0 : i32, i32, i32
  }
  func.func @transform_3(%arg0: i32, %arg1: i32) -> (i32, i32, i32) {
    %c0_i32 = arith.constant 0 : i32
    %c0_i32_0 = arith.constant 0 : i32
    %c0_i32_1 = arith.constant 0 : i32
    return %arg1, %c0_i32, %c0_i32_0 : i32, i32, i32
  }
  func.func @transform_4(%arg0: i32, %arg1: i32) -> (i32, i32, i32) {
    %c0_i32 = arith.constant 0 : i32
    %c0_i32_0 = arith.constant 0 : i32
    %c0_i32_1 = arith.constant 0 : i32
    return %arg1, %c0_i32, %c0_i32_0 : i32, i32, i32
  }
  func.func @transform_5(%arg0: i32, %arg1: i32) -> (i32, i32, i32) {
    %c0_i32 = arith.constant 0 : i32
    %c0_i32_0 = arith.constant 0 : i32
    %c0_i32_1 = arith.constant 0 : i32
    return %arg1, %c0_i32, %c0_i32_0 : i32, i32, i32
  }
  func.func @transform_6(%arg0: i32, %arg1: i32) -> (i32, i32, i32) {
    %c0_i32 = arith.constant 0 : i32
    %c0_i32_0 = arith.constant 0 : i32
    %c0_i32_1 = arith.constant 0 : i32
    return %arg1, %c0_i32, %c0_i32_0 : i32, i32, i32
  }
  func.func @transform_7(%arg0: i32, %arg1: i32) -> (i32, i32, i32) {
    %c0_i32 = arith.constant 0 : i32
    %c0_i32_0 = arith.constant 0 : i32
    %c0_i32_1 = arith.constant 0 : i32
    return %arg1, %c0_i32, %c0_i32_0 : i32, i32, i32
  }
  func.func @transform_8(%arg0: i32, %arg1: i32) -> (i32, i32, i32) {
    %c0_i32 = arith.constant 0 : i32
    %c0_i32_0 = arith.constant 0 : i32
    %c0_i32_1 = arith.constant 0 : i32
    return %arg1, %c0_i32, %c0_i32_0 : i32, i32, i32
  }
  func.func @transform_9(%arg0: i32, %arg1: i32) -> (i32, i32, i32) {
    %c0_i32 = arith.constant 0 : i32
    %c0_i32_0 = arith.constant 0 : i32
    %c0_i32_1 = arith.constant 0 : i32
    return %arg1, %c0_i32, %c0_i32_0 : i32, i32, i32
  }
  func.func @transform_10(%arg0: i32, %arg1: i32) -> (i32, i32, i32) {
    %c0_i32 = arith.constant 0 : i32
    %c0_i32_0 = arith.constant 0 : i32
    %c0_i32_1 = arith.constant 0 : i32
    return %arg1, %c0_i32, %c0_i32_0 : i32, i32, i32
  }
  func.func @transform_11(%arg0: i32, %arg1: i32) -> (i32, i32, i32) {
    %c0_i32 = arith.constant 0 : i32
    %c0_i32_0 = arith.constant 0 : i32
    %c0_i32_1 = arith.constant 0 : i32
    return %arg1, %c0_i32, %c0_i32_0 : i32, i32, i32
  }
  func.func @transform_12(%arg0: i32, %arg1: i32) -> (i32, i32, i32) {
    %c0_i32 = arith.constant 0 : i32
    %c0_i32_0 = arith.constant 0 : i32
    %c0_i32_1 = arith.constant 0 : i32
    return %arg1, %c0_i32, %c0_i32_0 : i32, i32, i32
  }
  func.func @transform_13(%arg0: i32, %arg1: i32) -> (i32, i32, i32) {
    %c0_i32 = arith.constant 0 : i32
    %c0_i32_0 = arith.constant 0 : i32
    %c0_i32_1 = arith.constant 0 : i32
    return %arg0, %c0_i32, %c0_i32_0 : i32, i32, i32
  }
}

</mosaic_0001>

<bundles_post_ra>
// kernel: tpu_custom_call.1
= control target key start
LH: loop header
LB: loop body
LE: loop exit
PB: predicated region body
PF: predicated region fallthrough
CT: control target
= control target key end

     0   :  { %s3339_s0 = inlined_call_operand.vmem [shape: bf16[4,8,32], index: 0, kind: input, shape index: {}]   ;;  %s3340_s1 = inlined_call_operand.vmem [shape: f32[2,1,32], index: 1, kind: input, shape index: {}]   ;;  %s3341_s2 = inlined_call_operand.vmem [shape: f32[2,1,32], index: 2, kind: input, shape index: {}]   ;;  %s3342_s3 = inlined_call_operand.vmem [shape: bf16[2,32,96], index: 3, kind: input, shape index: {}]   ;;  %s3343_s4 = inlined_call_operand.vmem [shape: f32[2,1,96], index: 4, kind: input, shape index: {}]   ;;  %s3344_s5 = inlined_call_operand.vmem [shape: bf16[2,32,32], index: 5, kind: input, shape index: {}]   ;;  %s3345_s6 = inlined_call_operand.vmem [shape: f32[2,1,32], index: 6, kind: input, shape index: {}]   ;;  %s3346_s7 = inlined_call_operand.vmem [shape: f32[2,1,32], index: 7, kind: input, shape index: {}]   ;;  %s3347_s8 = inlined_call_operand.vmem [shape: f32[2,1,32], index: 8, kind: input, shape index: {}]   ;;  %s3348_s9 = inlined_call_operand.vmem [shape: bf16[2,32,128], index: 9, kind: input, shape index: {}]   ;;  %s3349_s10 = inlined_call_operand.vmem [shape: f32[2,1,128], index: 10, kind: input, shape index: {}]   ;;  %s3350_s11 = inlined_call_operand.vmem [shape: bf16[2,128,32], index: 11, kind: input, shape index: {}]   ;;  %s3351_s12 = inlined_call_operand.vmem [shape: f32[2,1,32], index: 12, kind: input, shape index: {}]   ;;  %s3352_s13 = inlined_call_operand.hbm [shape: f32[4,8,32], index: 13, kind: output, shape index: {}]  }
   0x1   :  { %3368 = sst [smem:[#allocation20_spill]] %s3339_s0 }
   0x2   :  { %3369 = sst [smem:[#allocation21_spill]] %s3342_s3 }
   0x3   :  { %3370 = sst [smem:[#allocation22_spill]] %s3344_s5 }
   0x4   :  { %3371 = sst [smem:[#allocation23_spill]] %s3346_s7 }
   0x5   :  { %3372 = sst [smem:[#allocation24_spill]] %s3350_s11 }
   0x6   :  { %3373 = sst [smem:[#allocation25_spill]] %s3352_s13 }
   0x7   :  { %18 = vsyncpa [#allocation5], 0 }
   0x8   :  { %20 = vsyncpa [#allocation5 + $0x1], 0  ;;  %s2853_s25 = smov 0   ;;  %s2855_s26 = smov 0  }
   0x9   :  { %s2857_s27 = smov 0   ;;  %s2859_s28 = smov 0  }
   0xa   :  { %s2861_s29 = smov 0   ;;  %s2863_s30 = smov 0  }
   0xb   :  { %s2865_s14 = smov 0   ;;  %s2867_s15 = smov 0  }
   0xc LB: > { %3374 = sst [smem:[#allocation7_spill]] %s2735_s25  ;;  %s2247_s16 = sadd.s32 4294967295, %s2763_s15   ;;  %s2763_s15 = sphi %s2867_s15, %s26_s15   ;;  %s2759_s14 = sphi %s2865_s14, %s3417_s14   ;;  %s2755_s30 = sphi %s2863_s30, %s3416_s30   ;;  %s2751_s29 = sphi %s2861_s29, %s3415_s29   ;;  %s2747_s28 = sphi %s2859_s28, %s3414_s28   ;;  %s2743_s27 = sphi %s2857_s27, %s3413_s27   ;;  %s2739_s26 = sphi %s2855_s26, %s3412_s26   ;;  %s2735_s25 = sphi %s2853_s25, %s3411_s25  }
   0xd   : > { %3375 = sst [smem:[#allocation8_spill]] %s2739_s26  ;;  %s2248_s17 = sadd.s32 4294967294, %s2763_s15  }
   0xe   : > { %3376 = sst [smem:[#allocation9_spill]] %s2743_s27  ;;  %s35_s18 = sadd.s32 1, %s2755_s30 }
   0xf   : > { %3377 = sst [smem:[#allocation10_spill]] %s2747_s28  ;;  %p36_p0 = scmp.ge.s32.totalorder %s35_s18, 2 }
  0x10   : > { %3378 = sst [smem:[#allocation11_spill]] %s2751_s29  ;;  %s38_s19 = sadd.s32 1, %s2759_s14 }
  0x11   : > { %3379 = sst [smem:[#allocation12_spill]] %s2755_s30  ;;  %p393_p1 = scmp.ne.s32.totalorder %s2743_s27, %s2739_s26 }
  0x12   : > { %3380 = sst [smem:[#allocation13_spill]] %s2759_s14  ;;  %p394_p2 = scmp.eq.s32.totalorder %s2247_s16, 3 }
  0x13   : > { %3381 = sst [smem:[#allocation14_spill]] %s2763_s15  ;;  %s3419_s18 = smov (%p36_p0, %s35_s18), 0 }
  0x14   : > { %3382 = sst [smem:[#allocation15_spill]] %s3419_s18  ;;  %s3421_s19 = smov (!%p36_p0, %s38_s19), %s2759_s14 }
  0x15   : > { %p2902_p3 = por %p394_p2, %p393_p1  ;;  %p399_p4 = scmp.ne.s32.totalorder %s2739_s26, %s2735_s25 }
  0x16   : > { %p40_p5 = scmp.ge.s32.totalorder %s3421_s19, 2  ;;  %p400_p6 = scmp.eq.s32.totalorder %s2248_s17, 3 }
  0x17   : > { %s3383_s20 = scalar_select %p2902_p3, 1, 0 }
  0x18   : > { %p2251_p7 = scmp.ge.s32.totalorder %s2763_s15, 1  ;;  %p507_p8 = scmp.lt.s32.totalorder %s2763_s15, 5 }
  0x19   : > { %3384 = sst [smem:[#allocation16_spill]] %s3383_s20  ;;  %s3423_s19 = smov (%p40_p5, %s3421_s19), 0 }
  0x1a   : > { %3385 = sst [smem:[#allocation17_spill]] %s3423_s19  ;;  %p2912_p9 = por %p400_p6, %p399_p4 }
  0x1b   : > { %p508_p10 = pnand %p2251_p7, %p507_p8  ;;  %s380_s22 = ssub.s32 %s2759_s14, %s3423_s19 }
  0x1c   : > { %s3386_s21 = scalar_select %p2912_p9, 1, 0 }
  0x1d   : > { %s383_s23 = sadd.s32 1, %s2743_s27  ;;  %p381_p11 = scmp.eq.s32.totalorder %s380_s22, 0 }
  0x1e   : > { %3387 = sst [smem:[#allocation18_spill]] %s3386_s21  ;;  %511 = sbr.rel (%p508_p10) target bundleno = 3442 (0xd72), region = 72 }
  0x1f   : > { %s2920_s24 = scalar_select %p381_p11, %s2743_s27, %s383_s23  }
  0x20   : > { %s3355_s16 = sand.u32 (!%p508_p10), 1, %s2739_s26   ;;  %s2253_s17 = sshll.u32 (!%p508_p10), %s2751_s29, 1 }
  0x21   : > { %3388 = sst [smem:[#allocation19_spill]] %s2920_s24  ;;  %s2252_s18 = sshll.u32 (!%p508_p10), %s3355_s16, 4 }
  0x22   : > { %p596_p12 = scmp.lt.s32.totalorder (!%p508_p10), %s2253_s17, 3  ;;  %p601_p13 = scmp.lt.s32.totalorder (!%p508_p10), %s2747_s28, 1 }
  0x23   : > { %s3389_s0 = sld [smem:[#allocation20_spill]]  ;;  %s2987_s26 = scalar_lea.vmem [#allocation4], %s2252_s18 }
  0x24   : > { %s3425_s17 = smov (!%p596_p12, %s2253_s17), 3  ;;  %s3390_s3 = sld [smem:[#allocation21_spill]] }
  0x25   : > { %s2928_s30 = scalar_select %p601_p13, %s2747_s28, 1 }
  0x26   : > { %s2254_s22 = sshll.u32 %s3425_s17, 2  ;;  %s3391_s5 = sld [smem:[#allocation22_spill]] }
  0x27   : > { %s2319_s13 = sshll.u32 %s2928_s30, 4  ;;  %s636_s11 = scalar_lea.vmem %s3349_s10, %s2928_s30 }
  0x28   : > { %s2971_s17 = scalar_lea.vmem %s3348_s9, %s2319_s13  ;;  %s644_s25 = scalar_lea.vmem %s3351_s12, %s2928_s30 }
  0x29   : > { %s599_s16 = scalar_lea.vmem %s3389_s0, %s2254_s22  ;;  %s628_s0 = scalar_lea.vmem %s3347_s8, %s2928_s30 }
  0x2a   : > { %s2945_s29 = scalar_lea.vmem %s3390_s3, %s2319_s13  ;;  %s3393_s27 = sld [smem:[#allocation24_spill]] }
  0x2b   : > { %s3394_s20 = sld [smem:[#allocation10_spill]] }
  0x2c   : > { %s2954_s23 = scalar_lea.vmem %s3391_s5, %s2319_s13  ;;  %s2322_s5 = sshll.u32 %s2928_s30, 6 }
  0x30   : > { %s2985_s7 = scalar_lea.vmem %s3393_s27, %s2322_s5 }
  0x31   : > { %p2263_p0 = scmp.ne.s32.totalorder %s3394_s20, 0 }
  0x33   : > { %652 = sbr.rel (%p2263_p0) target bundleno = 60 (0x3c), region = 76 }
  0x38   : > { %v2331_v0 = vld [vmem:[%s599_s16] sm:$0xff]   ;;  %vm657_vm0 = vcmask 261120  }
  0x39   : > { %v2332_v1 = vunpack.c.l.bf16 %v2331_v0  ;;  %v2333_v2 = vunpack.c.h.bf16 %v2331_v0 }
  0x3b   : > { %658 = vst.msk [vmem:[#allocation2] sm:$0xff] %vm657_vm0, %v2332_v1  ;;  %659 = vst.msk [vmem:[#allocation2 + $0x8] sm:$0xff] %vm657_vm0, %v2333_v2 }
  0x3c PF: > { %vm664_vm1 = vcmask 261120   ;;  %v2612_v17 = vld [vmem:[%s2945_s29 + $0x8] sm:$0xff]   ;;  %v2765_v18 = vmov 0.0   ;;  %vm2766_vm2 = vmmov 0   ;;  %v2613_v19 = vld [vmem:[%s2945_s29] sm:$0xff]   ;;  %s3395_s13 = scalar_lea.vmem %s3340_s1, %s2928_s30  ;;  %s3396_s18 = scalar_lea.vmem %s3341_s2, %s2928_s30  ;;  %vm785_vm3 = vcmask 64512  }
  0x3d   : > { %2384 = vmatprep.subr.bf16.mxu0 %v2765_v18  ;;  %2388 = vmatprep.mubr.msk.bf16.mxu0 %vm2766_vm2, %v2765_v18  ;;  %v2264_v28 = vld [vmem:[%s3395_s13] ss:$0 sm:$0xff]  ;;  %s3397_s19 = scalar_lea.vmem %s3343_s4, %s2928_s30  ;;  %s2767_s22 = smov 96   ;;  %vm908_vm4 = vcmask 1043456   ;;  %vm1004_vm5 = vcmask 60416   ;;  %vm1243_vm6 = vcmask 126016  }
  0x3e   : > { %2385 = vmatpush3.bf16.msra.mxu0 %v2612_v17  ;;  %2404 = vmatprep.subr.bf16.mxu1 %v2765_v18  ;;  %v2265_v32 = vld [vmem:[%s3396_s18] ss:$0 sm:$0xff]  ;;  %s2768_s14 = smov 64   ;;  %s2769_s24 = smov 88   ;;  %vm1480_vm7 = vcmask 191616   ;;  %vm1717_vm8 = vcmask 257216  }
  0x3f   : > { %2386 = vmatprep.subr.bf16.mxu0 %v2765_v18  ;;  %2406 = vmatprep.mubr.msk.bf16.mxu1 %vm2766_vm2, %v2765_v18  ;;  %v2266_v37 = vld [vmem:[%s3397_s19] ss:$0 sm:$0xff]  ;;  %s2770_s15 = smov 120   ;;  %s2771_s21 = smov 56  }
  0x40   : > { %s2772_s20 = smov 80   ;;  %s2773_s3 = smov 112  }
  0x41   : > { %s2774_s5 = smov 48   ;;  %s2775_s13 = smov 72  }
  0x42   : > { %v2990_v3 = vld [vmem:[#allocation2] sm:$0xff]  ;;  %v2992_v4 = vld [vmem:[#allocation2 + $0x8] sm:$0xff]  ;;  %2387 = vmatpush3.bf16.msra.mxu0 %v2613_v19  ;;  %s2776_s27 = smov 104   ;;  %s2777_s29 = smov 40  }
  0x43   : > { %v665_v5 = vsel %vm664_vm1, %v2990_v3, 0.0  ;;  %v668_v6 = vsel %vm664_vm1, %v2992_v4, 0.0  ;;  %2392 = vmatprep.subr.bf16.mxu0 %v2765_v18  ;;  %s2778_s18 = smov 8   ;;  %s2779_s16 = smov 16  }
  0x44   : > { %666 = vadd.xlane.f32.xlu0 %v665_v5  ;;  %s2780_s28 = smov 24  }
  0x48   : > { %669 = vadd.xlane.f32.xlu0 %v668_v6 }
  0xcd   : > { %v667_v7 = vpop.xlane.xlu0 %666 }
  0xce   : > { %v672_v8 = vmul.f32 0.03125, %v667_v7 }
  0xd0   : > { %v674_v9 = vsub.f32 %v2990_v3, %v672_v8 }
  0xd1   : > { %v670_v10 = vpop.xlane.xlu0 %669 }
  0xd2   : > { %v673_v11 = vmul.f32 0.03125, %v670_v10  ;;  %v676_v12 = vmul.f32 %v674_v9, %v674_v9 }
  0xd4   : > { %v675_v13 = vsub.f32 %v2992_v4, %v673_v11  ;;  %v678_v14 = vsel %vm664_vm1, %v676_v12, 0.0 }
  0xd5   : > { %679 = vadd.xlane.f32.xlu1 %v678_v14 }
  0xd6   : > { %v677_v15 = vmul.f32 %v675_v13, %v675_v13 }
  0xd8   : > { %v681_v16 = vsel %vm664_vm1, %v677_v15, 0.0 }
  0xd9   : > { %682 = vadd.xlane.f32.xlu1 %v681_v16 }
 0x15e   : > { %v680_v20 = vpop.xlane.xlu1 %679 }
 0x15f   : > { %v684_v21 = vmul.f32 0.03125, %v680_v20 }
 0x161   : > { %v686_v22 = vadd.f32 1e-05, %v684_v21 }
 0x162   : > { %v683_v23 = vpop.xlane.xlu1 %682 }
 0x163   : > { %2627 = vrsqrt.f32 %v686_v22  ;;  %v685_v24 = vmul.f32 0.03125, %v683_v23 }
 0x165   : > { %v687_v25 = vadd.f32 1e-05, %v685_v24 }
 0x167   : > { %2629 = vrsqrt.f32 %v687_v25 }
 0x170   : > { %v2628_v26 = vpop.eup %2627 }
 0x171   : > { %v690_v27 = vmul.f32 %v2628_v26, %v674_v9 }
 0x173   : > { %v698_v31 = vmul.f32 %v2264_v28, %v690_v27 }
 0x174   : > { %v2630_v29 = vpop.eup %2629 }
 0x175   : > { %v691_v30 = vmul.f32 %v2630_v29, %v675_v13  ;;  %v706_v34 = vadd.f32 %v2265_v32, %v698_v31 }
 0x177   : > { %v699_v33 = vmul.f32 %v2264_v28, %v691_v30 }
 0x179   : > { %v707_v35 = vadd.f32 %v2265_v32, %v699_v33 }
 0x17b   : > { %v708_v36 = vpack.c.bf16 %v707_v35, %v706_v34 }
 0x17d   : > { %2389 = vmatmul.mubr.msk.bf16.vlgmr.msra.gmra.mxu0 %vm664_vm1, %v708_v36 }
 0x17e   : > { %2394 = vmatprep.mubr.msk.bf16.mxu0 %vm2766_vm2, %v2765_v18 }
 0x23d   : > { %v769_v38 = vpop.f32.mrf.mxu0 }
 0x23e   : > { %v770_v39 = vadd.f32 %v2266_v37, %v769_v38 }
 0x23f   : > { %v2390_v40 = vpop.f32.mrf.mxu0 }
 0x240   : > { %v3030_v41 = vpack.c.bf16 %v770_v39, %v770_v39  ;;  %v776_v48 = vmul.f32 0.35355338, %v770_v39 }
 0x241   : > { %v772_v42 = vpop.f32.mrf.mxu0 }
 0x242   : > { %v773_v43 = vadd.f32 %v2266_v37, %v772_v42  ;;  %783 = vrot.lane.b32.xlu0 %v3030_v41, %s2767_s22  ;;  %v3038_v50 = vpack.c.bf16 %v776_v48, %v776_v48 }
 0x243   : > { %v2391_v44 = vpop.f32.mrf.mxu0 }
 0x244   : > { %v3033_v45 = vpack.c.bf16 %v773_v43, %v773_v43  ;;  %v777_v52 = vmul.f32 0.35355338, %v773_v43 }
 0x246   : > { %833 = vrot.lane.b32.xlu1 %v3033_v45, %s2767_s22  ;;  %v3046_v53 = vpack.c.bf16 %v777_v52, %v777_v52  ;;  %s3398_s22 = scalar_lea.vmem %s3345_s6, %s2928_s30 }
 0x2b4   : > { %v784_v46 = vpop.permute.xlu0 %783 }
 0x2b5   : > { %v790_v47 = vsel %vm785_vm3, %v784_v46, 0 }
 0x2b6   : > { %2393 = vmatpush3.bf16.xpose.msra.mxu0 %v790_v47 }
 0x2b7   : > { %2398 = vmatprep.subr.bf16.mxu0 %v2765_v18 }
 0x2b8   : > { %v834_v49 = vpop.permute.xlu1 %833 }
 0x2b9   : > { %v839_v51 = vsel %vm785_vm3, %v834_v49, 0 }
 0x2bd   : > { %2395 = vmatmul.mubr.msk.bf16.vlgmr.msra.gmra.mxu0 %vm785_vm3, %v3038_v50 }
 0x2be   : > { %2399 = vmatpush3.bf16.xpose.msra.mxu0 %v839_v51  ;;  %2400 = vmatprep.mubr.msk.bf16.mxu0 %vm2766_vm2, %v2765_v18 }
 0x2bf   : > { %2410 = vmatprep.subr.bf16.mxu0 %v2765_v18 }
 0x2c5   : > { %2401 = vmatmul.mubr.msk.bf16.vlgmr.msra.gmra.mxu0 %vm785_vm3, %v3046_v53 }
 0x2c6   : > { %2412 = vmatprep.mubr.msk.bf16.mxu0 %vm2766_vm2, %v2765_v18 }
 0x37d   : > { %v826_v54 = vpop.f32.mrf.mxu0 }
 0x37e   : > { %v881_v55 = vsel %vm785_vm3, %v826_v54, -inf }
 0x37f   : > { %882 = vmax.xlane.f32.xlu1 %v881_v55  ;;  %v2396_v56 = vpop.f32.mrf.mxu0 }
 0x381   : > { %v829_v57 = vpop.f32.mrf.mxu0 }
 0x383   : > { %v2397_v58 = vpop.f32.mrf.mxu0 }
 0x385   : > { %v875_v59 = vpop.f32.mrf.mxu0 }
 0x386   : > { %v884_v60 = vsel %vm785_vm3, %v875_v59, -inf }
 0x387   : > { %885 = vmax.xlane.f32.xlu0 %v884_v60  ;;  %v2402_v61 = vpop.f32.mrf.mxu0 }
 0x389   : > { %v878_v62 = vpop.f32.mrf.mxu0 }
 0x38b   : > { %v2403_v63 = vpop.f32.mrf.mxu0 }
 0x390   : > { %952 = vrot.lane.b32.xlu1 %v3033_v45, %s2768_s14 }
 0x394   : > { %1010 = vrot.lane.b32.xlu1 %v3030_v41, %s2769_s24 }
 0x398   : > { %1061 = vrot.lane.b32.xlu1 %v3033_v45, %s2769_s24 }
 0x39c   : > { %1059 = vrot.lane.b32.xlu1 %v3046_v53, %s2770_s15 }
 0x39d   : > { %903 = vrot.lane.b32.xlu0 %v3030_v41, %s2768_s14 }
 0x3a0   : > { %1179 = vrot.lane.b32.xlu1 %v3033_v45, %s2771_s21 }
 0x3a1   : > { %1008 = vrot.lane.b32.xlu0 %v3038_v50, %s2770_s15  ;;  %s3399_s15 = sld [smem:[#allocation23_spill]] }
 0x408   : > { %v883_v0 = vpop.xlane.xlu1 %882 }
 0x409   : > { %v887_v1 = vsub.f32 %v826_v54, %v883_v0 }
 0x40b   : > { %v889_v2 = vmul.f32 1.442695, %v887_v1 }
 0x40c   : > { %v953_v5 = vpop.permute.xlu1 %952 }
 0x40d   : > { %2631 = vpow2.f32 %v889_v2  ;;  %v958_v6 = vsel %vm908_vm4, %v953_v5, 0 }
 0x40e   : > { %2411 = vmatpush3.bf16.msra.mxu0 %v958_v6 }
 0x40f   : > { %2422 = vmatprep.subr.bf16.mxu0 %v2765_v18 }
 0x410   : > { %v886_v7 = vpop.xlane.xlu0 %885  ;;  %v1011_v12 = vpop.permute.xlu1 %1010 }
 0x411   : > { %v888_v8 = vsub.f32 %v875_v59, %v886_v7  ;;  %v1016_v15 = vsel %vm785_vm3, %v1011_v12, 0 }
 0x413   : > { %v891_v9 = vmul.f32 1.442695, %v888_v8 }
 0x414   : > { %v904_v10 = vpop.permute.xlu0 %903  ;;  %v1062_v16 = vpop.permute.xlu1 %1061 }
 0x415   : > { %2633 = vpow2.f32 %v891_v9  ;;  %v910_v11 = vsel %vm908_vm4, %v904_v10, 0  ;;  %v1067_v22 = vsel %vm785_vm3, %v1062_v16, 0 }
 0x416   : > { %2405 = vmatpush3.bf16.msra.mxu1 %v910_v11 }
 0x417   : > { %2416 = vmatprep.subr.bf16.mxu1 %v2765_v18 }
 0x418   : > { %v1060_v20 = vpop.permute.xlu1 %1059  ;;  %v1009_v21 = vpop.permute.xlu0 %1008 }
 0x41a   : > { %v3066_v13 = vpop.eup %2631 }
 0x41b   : > { %v901_v14 = vpack.c.bf16 %v3066_v13, %v3066_v13 }
 0x41c   : > { %v1180_v23 = vpop.permute.xlu1 %1179 }
 0x41d   : > { %2407 = vmatmul.mubr.msk.bf16.vlgmr.msra.gmra.mxu1 %vm785_vm3, %v901_v14  ;;  %v1185_v24 = vsel %vm908_vm4, %v1180_v23, 0 }
 0x41e   : > { %2417 = vmatpush3.bf16.xpose.msra.mxu1 %v1016_v15  ;;  %2418 = vmatprep.mubr.msk.bf16.mxu1 %vm2766_vm2, %v2765_v18 }
 0x41f   : > { %2428 = vmatprep.subr.bf16.mxu1 %v2765_v18 }
 0x422   : > { %v3075_v17 = vpop.eup %2633 }
 0x423   : > { %v902_v19 = vpack.c.bf16 %v3075_v17, %v3075_v17 }
 0x425   : > { %2413 = vmatmul.mubr.msk.bf16.vlgmr.msra.gmra.mxu0 %vm785_vm3, %v902_v19  ;;  %2419 = vmatmul.mubr.msk.bf16.vlgmr.msra.gmra.mxu1 %vm785_vm3, %v1009_v21 }
 0x426   : > { %2423 = vmatpush3.bf16.xpose.msra.mxu0 %v1067_v22  ;;  %2424 = vmatprep.mubr.msk.bf16.mxu0 %vm2766_vm2, %v2765_v18 }
 0x427   : > { %2434 = vmatprep.subr.bf16.mxu0 %v2765_v18  ;;  %2430 = vmatprep.mubr.msk.bf16.mxu1 %vm2766_vm2, %v2765_v18 }
 0x42d   : > { %2425 = vmatmul.mubr.msk.bf16.vlgmr.msra.gmra.mxu0 %vm785_vm3, %v1060_v20 }
 0x42e   : > { %2435 = vmatpush3.bf16.msra.mxu0 %v1185_v24  ;;  %2436 = vmatprep.mubr.msk.bf16.mxu0 %vm2766_vm2, %v2765_v18 }
 0x42f   : > { %2446 = vmatprep.subr.bf16.mxu0 %v2765_v18 }
 0x4dd   : > { %v3092_v25 = vpop.f32.mrf.mxu1 }
 0x4df   : > { %v2408_v26 = vpop.f32.mrf.mxu1 }
 0x4e1   : > { %v949_v27 = vpop.f32.mrf.mxu1 }
 0x4e3   : > { %v2409_v28 = vpop.f32.mrf.mxu1 }
 0x4e5   : > { %v3094_v29 = vpop.f32.mrf.mxu0  ;;  %v1052_v30 = vpop.f32.mrf.mxu1 }
 0x4e6   : > { %v1109_v31 = vsel %vm785_vm3, %v1052_v30, -inf }
 0x4e7   : > { %1110 = vmax.xlane.f32.xlu0 %v1109_v31  ;;  %v2414_v32 = vpop.f32.mrf.mxu0  ;;  %v2420_v33 = vpop.f32.mrf.mxu1 }
 0x4e9   : > { %v997_v34 = vpop.f32.mrf.mxu0  ;;  %v1055_v35 = vpop.f32.mrf.mxu1 }
 0x4eb   : > { %v2415_v36 = vpop.f32.mrf.mxu0  ;;  %v2421_v37 = vpop.f32.mrf.mxu1 }
 0x4ed   : > { %v1103_v38 = vpop.f32.mrf.mxu0 }
 0x4ee   : > { %v1112_v39 = vsel %vm785_vm3, %v1103_v38, -inf }
 0x4ef   : > { %1113 = vmax.xlane.f32.xlu1 %v1112_v39  ;;  %v2426_v40 = vpop.f32.mrf.mxu0 }
 0x4f1   : > { %v1106_v42 = vpop.f32.mrf.mxu0 }
 0x4f3   : > { %v2427_v43 = vpop.f32.mrf.mxu0 }
 0x4fd   : > { %1131 = vrot.lane.b32.xlu0 %v3030_v41, %s2771_s21 }
 0x500   : > { %1298 = vrot.lane.b32.xlu1 %v3033_v45, %s2772_s20 }
 0x501   : > { %1248 = vrot.lane.b32.xlu0 %v3030_v41, %s2772_s20 }
 0x504   : > { %1296 = vrot.lane.b32.xlu1 %v3046_v53, %s2773_s3 }
 0x505   : > { %1246 = vrot.lane.b32.xlu0 %v3038_v50, %s2773_s3 }
 0x508   : > { %1416 = vrot.lane.b32.xlu1 %v3033_v45, %s2774_s5 }
 0x570   : > { %v1111_v44 = vpop.xlane.xlu0 %1110 }
 0x571   : > { %v1115_v46 = vsub.f32 %v1052_v30, %v1111_v44 }
 0x573   : > { %v1117_v47 = vmul.f32 1.442695, %v1115_v46 }
 0x574   : > { %v1132_v48 = vpop.permute.xlu0 %1131 }
 0x575   : > { %2635 = vpow2.f32 %v1117_v47  ;;  %v1137_v49 = vsel %vm908_vm4, %v1132_v48, 0 }
 0x576   : > { %2429 = vmatpush3.bf16.msra.mxu1 %v1137_v49 }
 0x577   : > { %2440 = vmatprep.subr.bf16.mxu1 %v2765_v18 }
 0x578   : > { %v1114_v51 = vpop.xlane.xlu1 %1113  ;;  %v1249_v56 = vpop.permute.xlu0 %1248 }
 0x579   : > { %v1116_v52 = vsub.f32 %v1103_v38, %v1114_v51  ;;  %v1254_v58 = vsel %vm785_vm3, %v1249_v56, 0 }
 0x57b   : > { %v1119_v54 = vmul.f32 1.442695, %v1116_v52 }
 0x57c   : > { %v1299_v59 = vpop.permute.xlu1 %1298  ;;  %v1247_v62 = vpop.permute.xlu0 %1246 }
 0x57d   : > { %2637 = vpow2.f32 %v1119_v54  ;;  %v1304_v0 = vsel %vm785_vm3, %v1299_v59, 0 }
 0x580   : > { %v1297_v63 = vpop.permute.xlu1 %1296 }
 0x582   : > { %v3108_v55 = vpop.eup %2635 }
 0x583   : > { %v1129_v57 = vpack.c.bf16 %v3108_v55, %v3108_v55 }
 0x584   : > { %v1417_v1 = vpop.permute.xlu1 %1416 }
 0x585   : > { %2431 = vmatmul.mubr.msk.bf16.vlgmr.msra.gmra.mxu1 %vm785_vm3, %v1129_v57  ;;  %v1422_v2 = vsel %vm908_vm4, %v1417_v1, 0 }
 0x586   : > { %2441 = vmatpush3.bf16.xpose.msra.mxu1 %v1254_v58  ;;  %2442 = vmatprep.mubr.msk.bf16.mxu1 %vm2766_vm2, %v2765_v18 }
 0x587   : > { %2452 = vmatprep.subr.bf16.mxu1 %v2765_v18 }
 0x58a   : > { %v3117_v60 = vpop.eup %2637 }
 0x58b   : > { %v1130_v61 = vpack.c.bf16 %v3117_v60, %v3117_v60 }
 0x58d   : > { %2437 = vmatmul.mubr.msk.bf16.vlgmr.msra.gmra.mxu0 %vm785_vm3, %v1130_v61  ;;  %2443 = vmatmul.mubr.msk.bf16.vlgmr.msra.gmra.mxu1 %vm785_vm3, %v1247_v62 }
 0x58e   : > { %2447 = vmatpush3.bf16.xpose.msra.mxu0 %v1304_v0  ;;  %2448 = vmatprep.mubr.msk.bf16.mxu0 %vm2766_vm2, %v2765_v18 }
 0x58f   : > { %2458 = vmatprep.subr.bf16.mxu0 %v2765_v18  ;;  %2454 = vmatprep.mubr.msk.bf16.mxu1 %vm2766_vm2, %v2765_v18 }
 0x595   : > { %2449 = vmatmul.mubr.msk.bf16.vlgmr.msra.gmra.mxu0 %vm785_vm3, %v1297_v63 }
 0x596   : > { %2459 = vmatpush3.bf16.msra.mxu0 %v1422_v2  ;;  %2460 = vmatprep.mubr.msk.bf16.mxu0 %vm2766_vm2, %v2765_v18 }
 0x597   : > { %2470 = vmatprep.subr.bf16.mxu0 %v2765_v18 }
 0x645   : > { %v3134_v5 = vpop.f32.mrf.mxu1 }
 0x647   : > { %v2432_v6 = vpop.f32.mrf.mxu1 }
 0x649   : > { %v1176_v7 = vpop.f32.mrf.mxu1 }
 0x64a   : > { %v1121_v7 = vsel %vm785_vm3, %v3108_v55, 0.0 }
 0x64b   : > { %v2433_v8 = vpop.f32.mrf.mxu1 }
 0x64d   : > { %v3136_v9 = vpop.f32.mrf.mxu0  ;;  %v1290_v10 = vpop.f32.mrf.mxu1 }
 0x64e   : > { %v1346_v11 = vsel %vm785_vm3, %v1290_v10, -inf }
 0x64f   : > { %1347 = vmax.xlane.f32.xlu0 %v1346_v11  ;;  %v2438_v12 = vpop.f32.mrf.mxu0  ;;  %v2444_v14 = vpop.f32.mrf.mxu1  ;;  %v1124_v11 = vsel %vm785_vm3, %v3117_v60, 0.0 }
 0x651   : > { %v1224_v15 = vpop.f32.mrf.mxu0  ;;  %v1293_v16 = vpop.f32.mrf.mxu1 }
 0x653   : > { %v2439_v19 = vpop.f32.mrf.mxu0  ;;  %v2445_v20 = vpop.f32.mrf.mxu1 }
 0x655   : > { %v1340_v21 = vpop.f32.mrf.mxu0 }
 0x656   : > { %v1349_v22 = vsel %vm785_vm3, %v1340_v21, -inf }
 0x657   : > { %1350 = vmax.xlane.f32.xlu1 %v1349_v22  ;;  %v2450_v23 = vpop.f32.mrf.mxu0 }
 0x659   : > { %v1343_v24 = vpop.f32.mrf.mxu0 }
 0x65a   : > { %v893_v24 = vsel %vm785_vm3, %v3066_v13, 0.0 }
 0x65b   : > { %v2451_v26 = vpop.f32.mrf.mxu0 }
 0x665   : > { %1368 = vrot.lane.b32.xlu0 %v3030_v41, %s2774_s5 }
 0x668   : > { %1535 = vrot.lane.b32.xlu1 %v3033_v45, %s2775_s13 }
 0x669   : > { %1485 = vrot.lane.b32.xlu0 %v3030_v41, %s2775_s13 }
 0x66c   : > { %1533 = vrot.lane.b32.xlu1 %v3046_v53, %s2776_s27 }
 0x66d   : > { %1483 = vrot.lane.b32.xlu0 %v3038_v50, %s2776_s27 }
 0x6d8   : > { %v1348_v27 = vpop.xlane.xlu0 %1347 }
 0x6d9   : > { %v1352_v28 = vsub.f32 %v1290_v10, %v1348_v27 }
 0x6db   : > { %v1354_v30 = vmul.f32 1.442695, %v1352_v28 }
 0x6dc   : > { %v1369_v31 = vpop.permute.xlu0 %1368 }
 0x6dd   : > { %2639 = vpow2.f32 %v1354_v30  ;;  %v1374_v32 = vsel %vm908_vm4, %v1369_v31, 0  ;;  %v896_v30 = vsel %vm785_vm3, %v3075_v17, 0.0 }
 0x6de   : > { %2453 = vmatpush3.bf16.msra.mxu1 %v1374_v32 }
 0x6df   : > { %2464 = vmatprep.subr.bf16.mxu1 %v2765_v18 }
 0x6e0   : > { %v1351_v33 = vpop.xlane.xlu1 %1350  ;;  %v1486_v37 = vpop.permute.xlu0 %1485 }
 0x6e1   : > { %v1353_v34 = vsub.f32 %v1340_v21, %v1351_v33  ;;  %v1491_v53 = vsel %vm785_vm3, %v1486_v37, 0 }
 0x6e3   : > { %v1356_v35 = vmul.f32 1.442695, %v1353_v34 }
 0x6e4   : > { %v1536_v39 = vpop.permute.xlu1 %1535  ;;  %v1484_v42 = vpop.permute.xlu0 %1483 }
 0x6e5   : > { %2641 = vpow2.f32 %v1356_v35  ;;  %v1541_v43 = vsel %vm785_vm3, %v1536_v39, 0 }
 0x6e8   : > { %v1534_v44 = vpop.permute.xlu1 %1533 }
 0x6ea   : > { %v2640_v36 = vpop.eup %2639 }
 0x6eb   : > { %v1366_v38 = vpack.c.bf16 %v2640_v36, %v2640_v36  ;;  %v1358_v8 = vsel %vm785_vm3, %v2640_v36, 0.0 }
 0x6ed   : > { %2455 = vmatmul.mubr.msk.bf16.vlgmr.msra.gmra.mxu1 %vm785_vm3, %v1366_v38 }
 0x6ee   : > { %2465 = vmatpush3.bf16.xpose.msra.mxu1 %v1491_v53  ;;  %2466 = vmatprep.mubr.msk.bf16.mxu1 %vm2766_vm2, %v2765_v18 }
 0x6ef   : > { %2476 = vmatprep.subr.bf16.mxu1 %v2765_v18 }
 0x6f2   : > { %v2642_v50 = vpop.eup %2641 }
 0x6f3   : > { %v1367_v40 = vpack.c.bf16 %v2642_v50, %v2642_v50  ;;  %v1361_v10 = vsel %vm785_vm3, %v2642_v50, 0.0 }
 0x6f5   : > { %2461 = vmatmul.mubr.msk.bf16.vlgmr.msra.gmra.mxu0 %vm785_vm3, %v1367_v40  ;;  %2467 = vmatmul.mubr.msk.bf16.vlgmr.msra.gmra.mxu1 %vm785_vm3, %v1484_v42 }
 0x6f6   : > { %2471 = vmatpush3.bf16.xpose.msra.mxu0 %v1541_v43  ;;  %2472 = vmatprep.mubr.msk.bf16.mxu0 %vm2766_vm2, %v2765_v18 }
 0x6f7   : > { %2482 = vmatprep.subr.bf16.mxu0 %v2765_v18  ;;  %2478 = vmatprep.mubr.msk.bf16.mxu1 %vm2766_vm2, %v2765_v18 }
 0x6fd   : > { %2473 = vmatmul.mubr.msk.bf16.vlgmr.msra.gmra.mxu0 %vm785_vm3, %v1534_v44 }
 0x6fe   : > { %2484 = vmatprep.mubr.msk.bf16.mxu0 %vm2766_vm2, %v2765_v18 }
 0x7ad   : > { %v3164_v46 = vpop.f32.mrf.mxu1 }
 0x7af   : > { %v2456_v47 = vpop.f32.mrf.mxu1 }
 0x7b1   : > { %v1413_v48 = vpop.f32.mrf.mxu1 }
 0x7b3   : > { %v2457_v49 = vpop.f32.mrf.mxu1 }
 0x7b5   : > { %v3166_v51 = vpop.f32.mrf.mxu0  ;;  %v1527_v52 = vpop.f32.mrf.mxu1 }
 0x7b6   : > { %v1583_v54 = vsel %vm785_vm3, %v1527_v52, -inf }
 0x7b7   : > { %1584 = vmax.xlane.f32.xlu0 %v1583_v54  ;;  %v2462_v56 = vpop.f32.mrf.mxu0  ;;  %v2468_v57 = vpop.f32.mrf.mxu1 }
 0x7b9   : > { %v1461_v58 = vpop.f32.mrf.mxu0  ;;  %v1530_v59 = vpop.f32.mrf.mxu1 }
 0x7bb   : > { %v2463_v61 = vpop.f32.mrf.mxu0  ;;  %v2469_v62 = vpop.f32.mrf.mxu1 }
 0x7bc   : > { %v2614_v62 = vld [vmem:[%s2954_s23 + $0x8] sm:$0xff]  }
 0x7bd   : > { %v1577_v63 = vpop.f32.mrf.mxu0 }
 0x7be   : > { %v1586_v0 = vsel %vm785_vm3, %v1577_v63, -inf }
 0x7bf   : > { %1587 = vmax.xlane.f32.xlu1 %v1586_v0  ;;  %v2474_v1 = vpop.f32.mrf.mxu0  ;;  %v2615_v0 = vld [vmem:[%s2954_s23] sm:$0xff]  }
 0x7c1   : > { %v1580_v2 = vpop.f32.mrf.mxu0 }
 0x7c3   : > { %v2475_v6 = vpop.f32.mrf.mxu0 }
 0x7cd   : > { %1605 = vrot.lane.b32.xlu0 %v3030_v41, %s2777_s29 }
 0x7d0   : > { %1653 = vrot.lane.b32.xlu1 %v3033_v45, %s2777_s29 }
 0x7ec   : > { %1122 = vadd.xlane.f32.xlu0 %v1121_v7 }
 0x7f0   : > { %1359 = vadd.xlane.f32.xlu0 %v1358_v8 }
 0x7f4   : > { %1362 = vadd.xlane.f32.xlu0 %v1361_v10  ;;  %1125 = vadd.xlane.f32.xlu1 %v1124_v11 }
 0x840   : > { %v1585_v12 = vpop.xlane.xlu0 %1584 }
 0x841   : > { %v1589_v14 = vsub.f32 %v1527_v52, %v1585_v12 }
 0x843   : > { %v1591_v15 = vmul.f32 1.442695, %v1589_v14 }
 0x844   : > { %v1606_v41 = vpop.permute.xlu0 %1605 }
 0x845   : > { %2643 = vpow2.f32 %v1591_v15  ;;  %v1611_v45 = vsel %vm908_vm4, %v1606_v41, 0 }
 0x846   : > { %2477 = vmatpush3.bf16.msra.mxu1 %v1611_v45 }
 0x847   : > { %2488 = vmatprep.subr.bf16.mxu1 %v2765_v18 }
 0x848   : > { %v1588_v55 = vpop.xlane.xlu1 %1587 }
 0x849   : > { %v1590_v16 = vsub.f32 %v1577_v63, %v1588_v55 }
 0x84b   : > { %v1593_v19 = vmul.f32 1.442695, %v1590_v16  ;;  %v2292_v16 = vld [vmem:[%s3398_s22] ss:$0 sm:$0xff] }
 0x84c   : > { %v1654_v20 = vpop.permute.xlu1 %1653 }
 0x84d   : > { %2645 = vpow2.f32 %v1593_v19  ;;  %v1659_v21 = vsel %vm908_vm4, %v1654_v20, 0 }
 0x84e   : > { %2483 = vmatpush3.bf16.msra.mxu0 %v1659_v21 }
 0x84f   : > { %2496 = vmatprep.subr.bf16.mxu0 %v2765_v18 }
 0x852   : > { %v2644_v60 = vpop.eup %2643 }
 0x853   : > { %v1595_v22 = vsel %vm785_vm3, %v2644_v60, 0.0  ;;  %v1603_v23 = vpack.c.bf16 %v2644_v60, %v2644_v60 }
 0x854   : > { %1596 = vadd.xlane.f32.xlu0 %v1595_v22 }
 0x855   : > { %2479 = vmatmul.mubr.msk.bf16.vlgmr.msra.gmra.mxu1 %vm785_vm3, %v1603_v23 }
 0x856   : > { %2492 = vmatprep.mubr.msk.bf16.mxu1 %vm2766_vm2, %v2765_v18  ;;  %2489 = vmatpush3.bf16.msra.mxu1 %v2614_v62  ;;  %v2625_v62 = vld [vmem:[%s2985_s7 + $0x8] sm:$0xff]  }
 0x857   : > { %2490 = vmatprep.subr.bf16.mxu1 %v2765_v18 }
 0x858   : > { %894 = vadd.xlane.f32.xlu0 %v893_v24 }
 0x85a   : > { %v2646_v26 = vpop.eup %2645  ;;  %2491 = vmatpush3.bf16.msra.mxu1 %v2615_v0  ;;  %v2299_v0 = vld [vmem:[%s636_s11] ss:$0 sm:$0xff]  ;;  %s3401_s11 = sld [smem:[#allocation10_spill]] }
 0x85b   : > { %v1598_v27 = vsel %vm785_vm3, %v2646_v26, 0.0  ;;  %v1604_v28 = vpack.c.bf16 %v2646_v26, %v2646_v26  ;;  %2504 = vmatprep.subr.bf16.mxu1 %v2765_v18 }
 0x85c   : > { %1599 = vadd.xlane.f32.xlu1 %v1598_v27 }
 0x85d   : > { %2485 = vmatmul.mubr.msk.bf16.vlgmr.msra.gmra.mxu0 %vm785_vm3, %v1604_v28 }
 0x85e   : > { %2500 = vmatprep.mubr.msk.bf16.mxu0 %vm2766_vm2, %v2765_v18 }
 0x860   : > { %897 = vadd.xlane.f32.xlu1 %v896_v30  ;;  %p2313_p1 = scmp.ne.s32.totalorder %s3401_s11, 1 }
 0x875   : > { %v1123_v31 = vpop.xlane.xlu0 %1122 }
 0x876   : > { %2647 = vrcp.f32 %v1123_v31 }
 0x879   : > { %v1360_v32 = vpop.xlane.xlu0 %1359 }
 0x87a   : > { %2649 = vrcp.f32 %v1360_v32 }
 0x87d   : > { %v1126_v33 = vpop.xlane.xlu1 %1125  ;;  %v1363_v13 = vpop.xlane.xlu0 %1362 }
 0x87e   : > { %2651 = vrcp.f32 %v1126_v33 }
 0x87f   : > { %2653 = vrcp.f32 %v1363_v13 }
 0x883   : > { %v2648_v34 = vpop.eup %2647 }
 0x884   : > { %v1227_v35 = vmul.f32 %v2648_v34, %v3134_v5 }
 0x886   : > { %v2323_v36 = vpack.c.bf16 %v1227_v35, %v1227_v35 }
 0x887   : > { %v2650_v37 = vpop.eup %2649 }
 0x888   : > { %1237 = vrot.lane.b32.xlu0 %v2323_v36, %s2778_s18  ;;  %v1464_v50 = vmul.f32 %v2650_v37, %v3164_v46  ;;  %v2617_v37 = vld [vmem:[%s2971_s17 + $0x8] sm:$0xff]  }
 0x889   : > { %2497 = vmatpush3.bf16.msra.mxu0 %v2617_v37 }
 0x88a   : > { %v2325_v40 = vpack.c.bf16 %v1464_v50, %v1464_v50  ;;  %2498 = vmatprep.subr.bf16.mxu0 %v2765_v18 }
 0x88b   : > { %v2652_v38 = vpop.eup %2651 }
 0x88c   : > { %v1228_v17 = vmul.f32 %v2652_v38, %v3136_v9  ;;  %v2654_v39 = vpop.eup %2653  ;;  %v2618_v38 = vld [vmem:[%s2971_s17] sm:$0xff]   ;;  %s3400_s17 = scalar_lea.vmem %s3399_s15, %s2928_s30 }
 0x88d   : > { %v1465_v42 = vmul.f32 %v2654_v39, %v3166_v51  ;;  %2499 = vmatpush3.bf16.msra.mxu0 %v2618_v38 }
 0x88e   : > { %v2324_v53 = vpack.c.bf16 %v1228_v17, %v1228_v17 }
 0x88f   : > { %v2326_v5 = vpack.c.bf16 %v1465_v42, %v1465_v42 }
 0x890   : > { %1239 = vrot.lane.b32.xlu1 %v2324_v53, %s2778_s18 }
 0x894   : > { %1474 = vrot.lane.b32.xlu1 %v2325_v40, %s2779_s16 }
 0x898   : > { %1476 = vrot.lane.b32.xlu1 %v2326_v5, %s2779_s16 }
 0x8dd   : > { %v1597_v43 = vpop.xlane.xlu0 %1596 }
 0x8e1   : > { %v895_v44 = vpop.xlane.xlu0 %894 }
 0x8e2   : > { %2655 = vrcp.f32 %v895_v44  ;;  %v2297_v44 = vld [vmem:[%s3400_s17] ss:$0 sm:$0xff] }
 0x8e5   : > { %v1600_v47 = vpop.xlane.xlu1 %1599 }
 0x8e9   : > { %v898_v48 = vpop.xlane.xlu1 %897 }
 0x8ea   : > { %2657 = vrcp.f32 %v898_v48 }
 0x8eb   : > { %2659 = vrcp.f32 %v1597_v43 }
 0x8ec   : > { %2661 = vrcp.f32 %v1600_v47 }
 0x8ef   : > { %v2656_v9 = vpop.eup %2655 }
 0x8f0   : > { %v1000_v49 = vmul.f32 %v2656_v9, %v3092_v25 }
 0x8f2   : > { %v1002_v46 = vpack.c.bf16 %v1000_v49, %v1000_v49  ;;  %v2298_v49 = vld [vmem:[%s628_s0] ss:$0 sm:$0xff] }
 0x8f4   : > { %1005 = vst.msk [vmem:[#allocation3] sm:$0xf] %vm1004_vm5, %v1002_v46 }
 0x8f7   : > { %v2658_v52 = vpop.eup %2657 }
 0x8f8   : > { %v1001_v51 = vmul.f32 %v2658_v52, %v3094_v29  ;;  %v2660_v59 = vpop.eup %2659 }
 0x8f9   : > { %v2662_v7 = vpop.eup %2661 }
 0x8fa   : > { %v1238_v54 = vpop.permute.xlu0 %1237  ;;  %v1003_v56 = vpack.c.bf16 %v1001_v51, %v1001_v51 }
 0x8fb   : > { %1244 = vst.msk [vmem:[#allocation3] sm:$0xf] %vm1243_vm6, %v1238_v54 }
 0x8fc   : > { %1006 = vst.msk [vmem:[#allocation3 + $0x4] sm:$0xf] %vm1004_vm5, %v1003_v56  ;;  %v2619_v56 = vld [vmem:[%s2985_s7 + $0x38] sm:$0xff]  }
 0x902   : > { %v1240_v57 = vpop.permute.xlu1 %1239 }
 0x903   : > { %1245 = vst.msk [vmem:[#allocation3 + $0x4] sm:$0xf] %vm1243_vm6, %v1240_v57  ;;  %v2620_v57 = vld [vmem:[%s2985_s7 + $0x30] sm:$0xff]  }
 0x906   : > { %v1475_v58 = vpop.permute.xlu1 %1474 }
 0x907   : > { %1481 = vst.msk [vmem:[#allocation3] sm:$0xf] %vm1480_vm7, %v1475_v58  ;;  %v2621_v58 = vld [vmem:[%s2985_s7 + $0x28] sm:$0xff]  }
 0x90a   : > { %v1477_v25 = vpop.permute.xlu1 %1476 }
 0x90b   : > { %1482 = vst.msk [vmem:[#allocation3 + $0x4] sm:$0xf] %vm1480_vm7, %v1477_v25  ;;  %v2622_v25 = vld [vmem:[%s2985_s7 + $0x20] sm:$0xff]  }
 0x915   : > { %v1647_v61 = vpop.f32.mrf.mxu1 }
 0x916   : > { %v1701_v63 = vmul.f32 %v2660_v59, %v1647_v61  ;;  %v2623_v59 = vld [vmem:[%s2985_s7 + $0x18] sm:$0xff]   ;;  %v2624_v61 = vld [vmem:[%s2985_s7 + $0x10] sm:$0xff]  }
 0x917   : > { %v2480_v29 = vpop.f32.mrf.mxu1 }
 0x918   : > { %v2327_v1 = vpack.c.bf16 %v1701_v63, %v1701_v63  ;;  %v2626_v63 = vld [vmem:[%s2985_s7] sm:$0xff]  }
 0x919   : > { %v1650_v2 = vpop.f32.mrf.mxu1 }
 0x91a   : > { %1711 = vrot.lane.b32.xlu0 %v2327_v1, %s2780_s28 }
 0x91b   : > { %v2481_v6 = vpop.f32.mrf.mxu1 }
 0x91d   : > { %v1695_v8 = vpop.f32.mrf.mxu0 }
 0x91e   : > { %v1702_v10 = vmul.f32 %v2662_v7, %v1695_v8 }
 0x91f   : > { %v2486_v11 = vpop.f32.mrf.mxu0 }
 0x920   : > { %v2328_v12 = vpack.c.bf16 %v1702_v10, %v1702_v10 }
 0x921   : > { %v1698_v14 = vpop.f32.mrf.mxu0 }
 0x922   : > { %1713 = vrot.lane.b32.xlu1 %v2328_v12, %s2780_s28 }
 0x923   : > { %v2487_v15 = vpop.f32.mrf.mxu0 }
 0x98c   : > { %v1712_v41 = vpop.permute.xlu0 %1711 }
 0x98d   : > { %1718 = vst.msk [vmem:[#allocation3] sm:$0xf] %vm1717_vm8, %v1712_v41 }
 0x994   : > { %v1714_v45 = vpop.permute.xlu1 %1713 }
 0x995   : > { %1719 = vst.msk [vmem:[#allocation3 + $0x4] sm:$0xf] %vm1717_vm8, %v1714_v45 }
 0x99c   : > { %v2616_v55 = vld [vmem:[#allocation3] sm:$0xff]  }
 0x99d   : > { %2493 = vmatmul.mubr.msk.bf16.vlgmr.msra.gmra.mxu1 %vm664_vm1, %v2616_v55  ;;  %v2304_v55 = vld [vmem:[%s644_s25] ss:$0 sm:$0xff] }
 0x99e   : > { %2520 = vmatprep.mubr.msk.bf16.mxu1 %vm2766_vm2, %v2765_v18  ;;  %2505 = vmatpush3.bf16.msra.mxu1 %v2619_v56 }
 0x99f   : > { %2506 = vmatprep.subr.bf16.mxu1 %v2765_v18 }
 0x9a2   : > { %2507 = vmatpush3.bf16.msra.mxu1 %v2620_v57 }
 0x9a3   : > { %2508 = vmatprep.subr.bf16.mxu1 %v2765_v18 }
 0x9a6   : > { %2509 = vmatpush3.bf16.msra.mxu1 %v2621_v58 }
 0x9a7   : > { %2510 = vmatprep.subr.bf16.mxu1 %v2765_v18 }
 0x9aa   : > { %2511 = vmatpush3.bf16.msra.mxu1 %v2622_v25 }
 0x9ab   : > { %2512 = vmatprep.subr.bf16.mxu1 %v2765_v18 }
 0x9ae   : > { %2513 = vmatpush3.bf16.msra.mxu1 %v2623_v59 }
 0x9af   : > { %2514 = vmatprep.subr.bf16.mxu1 %v2765_v18 }
 0x9b2   : > { %2515 = vmatpush3.bf16.msra.mxu1 %v2624_v61 }
 0x9b3   : > { %2516 = vmatprep.subr.bf16.mxu1 %v2765_v18 }
 0x9b6   : > { %2517 = vmatpush3.bf16.msra.mxu1 %v2625_v62 }
 0x9b7   : > { %2518 = vmatprep.subr.bf16.mxu1 %v2765_v18 }
 0x9ba   : > { %2519 = vmatpush3.bf16.msra.mxu1 %v2626_v63 }
 0xa5d   : > { %v1787_v19 = vpop.f32.mrf.mxu1 }
 0xa5e   : > { %v1788_v20 = vadd.f32 %v2292_v16, %v1787_v19 }
 0xa5f   : > { %v2494_v21 = vpop.f32.mrf.mxu1 }
 0xa60   : > { %v3215_v60 = vadd.f32 %v1788_v20, %v2990_v3 }
 0xa61   : > { %v1790_v22 = vpop.f32.mrf.mxu1 }
 0xa62   : > { %v1791_v23 = vadd.f32 %v2292_v16, %v1790_v22  ;;  %v1798_v24 = vsel %vm664_vm1, %v3215_v60, 0.0 }
 0xa63   : > { %1799 = vadd.xlane.f32.xlu0 %v1798_v24  ;;  %v2495_v26 = vpop.f32.mrf.mxu1 }
 0xa64   : > { %v3220_v27 = vadd.f32 %v1791_v23, %v2992_v4 }
 0xa66   : > { %v1801_v28 = vsel %vm664_vm1, %v3220_v27, 0.0 }
 0xa67   : > { %1802 = vadd.xlane.f32.xlu1 %v1801_v28 }
 0xaec   : > { %v1800_v30 = vpop.xlane.xlu0 %1799 }
 0xaed   : > { %v1804_v31 = vmul.f32 0.03125, %v1800_v30 }
 0xaef   : > { %v1806_v3 = vsub.f32 %v3215_v60, %v1804_v31 }
 0xaf0   : > { %v1803_v32 = vpop.xlane.xlu1 %1802 }
 0xaf1   : > { %v1805_v33 = vmul.f32 0.03125, %v1803_v32  ;;  %v1808_v13 = vmul.f32 %v1806_v3, %v1806_v3 }
 0xaf3   : > { %v1807_v34 = vsub.f32 %v3220_v27, %v1805_v33  ;;  %v1810_v35 = vsel %vm664_vm1, %v1808_v13, 0.0 }
 0xaf4   : > { %1811 = vadd.xlane.f32.xlu0 %v1810_v35 }
 0xaf5   : > { %v1809_v36 = vmul.f32 %v1807_v34, %v1807_v34 }
 0xaf7   : > { %v1813_v4 = vsel %vm664_vm1, %v1809_v36, 0.0 }
 0xaf8   : > { %1814 = vadd.xlane.f32.xlu0 %v1813_v4 }
 0xb7d   : > { %v1812_v17 = vpop.xlane.xlu0 %1811 }
 0xb7e   : > { %v1816_v53 = vmul.f32 0.03125, %v1812_v17 }
 0xb80   : > { %v1818_v50 = vadd.f32 1e-05, %v1816_v53 }
 0xb81   : > { %v1815_v39 = vpop.xlane.xlu0 %1814 }
 0xb82   : > { %2663 = vrsqrt.f32 %v1818_v50  ;;  %v1817_v40 = vmul.f32 0.03125, %v1815_v39 }
 0xb84   : > { %v1819_v42 = vadd.f32 1e-05, %v1817_v40 }
 0xb86   : > { %2665 = vrsqrt.f32 %v1819_v42 }
 0xb8f   : > { %v2664_v5 = vpop.eup %2663 }
 0xb90   : > { %v1822_v43 = vmul.f32 %v2664_v5, %v1806_v3 }
 0xb92   : > { %v1830_v9 = vmul.f32 %v2297_v44, %v1822_v43 }
 0xb93   : > { %v2666_v47 = vpop.eup %2665 }
 0xb94   : > { %v1823_v48 = vmul.f32 %v2666_v47, %v1807_v34  ;;  %v1838_v52 = vadd.f32 %v2298_v49, %v1830_v9 }
 0xb96   : > { %v1831_v46 = vmul.f32 %v2297_v44, %v1823_v48 }
 0xb98   : > { %v1839_v51 = vadd.f32 %v2298_v49, %v1831_v46 }
 0xb9a   : > { %v1840_v54 = vpack.c.bf16 %v1839_v51, %v1838_v52 }
 0xb9c   : > { %2501 = vmatmul.mubr.msk.bf16.vlgmr.msra.gmra.mxu0 %vm664_vm1, %v1840_v54 }
 0xc5c   : > { %v1901_v29 = vpop.f32.mrf.mxu0 }
 0xc5d   : > { %v1902_v6 = vadd.f32 %v2299_v0, %v1901_v29 }
 0xc5e   : > { %v2502_v1 = vpop.f32.mrf.mxu0 }
 0xc60   : > { %v1904_v2 = vpop.f32.mrf.mxu0 }
 0xc61   : > { %v1905_v7 = vadd.f32 %v2299_v0, %v1904_v2 }
 0xc62   : > { %v2503_v8 = vpop.f32.mrf.mxu0 }
 0xc63   : > { %v1908_v10 = vpack.c.bf16 %v1905_v7, %v1902_v6 }
 0xc65   : > { %v2303_v11 = vmul.bf16 3218784218, %v1908_v10 }
 0xc67   : > { %v1912_v12 = vmul.bf16 1069105081, %v2303_v11 }
 0xc69   : > { %2667 = vpow.bf16 %v1912_v12 }
 0xc77   : > { %v2668_v14 = vpop.eup %2667 }
 0xc78   : > { %v1914_v18 = vadd.bf16 1065369472, %v2668_v14 }
 0xc7a   : > { %2669 = vrcp.bf16 %v1914_v18 }
 0xc88   : > { %v2670_v15 = vpop.eup %2669 }
 0xc89   : > { %v1916_v41 = vmul.bf16 1065369472, %v2670_v15 }
 0xc8b   : > { %v1917_v45 = vmul.bf16 %v1916_v41, %v1908_v10 }
 0xc8d   : > { %2521 = vmatmul.mubr.bf16.vlgmr.msra.gmra.mxu1 %v1917_v45 }
 0xd4d   : > { %v2023_v16 = vpop.f32.mrf.mxu1 }
 0xd4e   : > { %v2024_v19 = vadd.f32 %v2304_v55, %v2023_v16 }
 0xd4f   : > { %v2522_v20 = vpop.f32.mrf.mxu1 }
 0xd50   : > { %v2030_v21 = vadd.f32 %v2024_v19, %v3215_v60 }
 0xd51   : > { %v2026_v22 = vpop.f32.mrf.mxu1 }
 0xd52   : > { %2032 = vst.msk [vmem:[#allocation2] sm:$0xff] %vm664_vm1, %v2030_v21  ;;  %v2027_v23 = vadd.f32 %v2304_v55, %v2026_v22  ;;  %2037 = sbr.rel (%p2313_p1) target bundleno = 3416 (0xd58), region = 80 }
 0xd53   : > { %v2523_v24 = vpop.f32.mrf.mxu1 }
 0xd54   : > { %v2031_v26 = vadd.f32 %v2027_v23, %v3220_v27 }
 0xd56   : > { %2033 = vst.msk [vmem:[#allocation2 + $0x8] sm:$0xff] %vm664_vm1, %v2031_v26 }
 0xd57   : > { %2038 = vst.msk [vmem:[%s2987_s26] sm:$0xff] %vm664_vm1, %v2030_v21  ;;  %2039 = vst.msk [vmem:[%s2987_s26 + $0x8] sm:$0xff] %vm664_vm1, %v2031_v26 }
 0xd58 PF: > { %s3402_s30 = sld [smem:[#allocation11_spill]]  ;;  %s2054_s22 = sshll.u32 %s2987_s26, 4  ;;  %s3283_s22 = int_to_ptr.vmem [resolvable:$true] %s2054_s22 }
 0xd59   : > { %s3403_s25 = sld [smem:[#allocation8_spill]]  ;;  %s2671_s15 = scalar_lea.vmem %s3283_s22, 256 }
 0xd5a   : > { %s3405_s28 = sld [smem:[#allocation25_spill]]  ;;  %p2672_p2 = scmp.ne.s32.totalorder %s3283_s22, %s2671_s15 }
 0xd5b   : > { %s2781_s17 = smov [#allocation4]  }
 0xd5c   : > { %p2673_p4 = pnand %p2672_p2, %p2902_p3  ;;  %s2675_s21 = sshll.u32 %s2781_s17, 4  ;;  %s2676_s21 = int_to_ptr.vmem [resolvable:$false] %s2675_s21 }
 0xd5d   : > { %s2677_s20 = scalar_lea.vmem %s2676_s21, 512  ;;  %p2678_p6 = scmp.lt.s32.totalorder %s3283_s22, %s2676_s21 }
 0xd5e   : > { %s2329_s27 = sshll.u32 %s3402_s30, 8  ;;  %p2674_p5 = pneg %p2673_p4 }
 0xd5f   : > { %s3407_s14 = sand.u32 1, %s3403_s25   ;;  %p2679_p7 = scmp.lt.s32.totalorder %s2677_s20, %s2671_s15 }
 0xd60   : > { %s3406_s23 = smov %s3405_s28  ;;  %s3280_s19 = scalar_lea.hbm %s3405_s28, %s2329_s27 }
 0xd61   : > { %s3287_s24 = scalar_lea.sflag [#allocation5], %s3407_s14  ;;  %p2680_p8 = por %p2679_p7, %p2678_p6 }
 0xd63   : > { %p2681_p10 = pnand %p2680_p8, %p2674_p5 }
 0xd65   : > { %2684 = shalt.err (!%p2681_p10)
}
 0xd66   : > { %s2685_s26 = scalar_lea.hbm %s3280_s19, 256  ;;  %s2689_s7 = scalar_lea.hbm %s3406_s23, 512 }
 0xd67   : > { %p2686_p11 = scmp.ne.s32.totalorder %s3280_s19, %s2685_s26  ;;  %p2690_p0 = scmp.lt.s32.totalorder %s3280_s19, %s3406_s23 }
 0xd68   : > { %p2691_p1 = scmp.lt.s32.totalorder %s2689_s7, %s2685_s26 }
 0xd69   : > { %p2687_p12 = pnand %p2686_p11, %p2902_p3 }
 0xd6a   : > { %p2692_p2 = por %p2691_p1, %p2690_p0 }
 0xd6b   : > { %p2688_p13 = pneg %p2687_p12 }
 0xd6d   : > { %p2693_p4 = pnand %p2692_p2, %p2688_p13 }
 0xd6f   : > { %2696 = shalt.err (!%p2693_p4)
}
 0xd70   : > { %s2782_s30 = smov 128  }
 0xd71   : > { %2524 = dma.vmem_to_hbm [thread:$0]  (%p2902_p3), %s3283_s22, 256, %s3280_s19, %s3287_s24, %s2782_s30, %s2782_s30, %s2778_s18  }
 0xd72 PF: > { %s3408_s25 = sld [smem:[#allocation14_spill]] }
 0xd73   : > { %s3409_s27 = sld [smem:[#allocation7_spill]] }
 0xd78   : > { %p2530_p5 = scmp.ge.s32.totalorder %s3408_s25, 2 }
 0xd79   : > { %s2069_s16 = sand.u32 1, %s3409_s27  }
 0xd7a   : > { %p2527_p6 = pnand %p2530_p5, %p2912_p9  ;;  %s2070_s28 = scalar_lea.sflag [#allocation5], %s2069_s16 }
 0xd7c   : > { %p2528_p7 = pneg %p2527_p6 }
 0xd7e   : > { %2730 = dma.done.wait (%p2528_p7), %s2070_s28, 256  }
 0xd7f   : > { %2732 = vsyncadd (%p2528_p7), %s2070_s28, 4294967040  ;;  %s26_s15 = sadd.s32 1, %s3408_s25   ;;  %s3411_s25 = sld [smem:[#allocation8_spill]] }
 0xd80   : > { %p23_p8 = scmp.ge.s32.totalorder %s26_s15, 6   ;;  %s3412_s26 = sld [smem:[#allocation9_spill]] }
 0xd81   : > { %s3413_s27 = sld [smem:[#allocation19_spill]] }
 0xd82   : > { %s3414_s28 = sld [smem:[#allocation12_spill]]  ;;  %25 = sbr.rel (!%p23_p8) target bundleno = 12 (0xc), region = 151 }
 0xd83   : > { %s3415_s29 = sld [smem:[#allocation13_spill]] }
 0xd84   : > { %s3416_s30 = sld [smem:[#allocation15_spill]] }
 0xd85   : > { %s3417_s14 = sld [smem:[#allocation17_spill]] }
 0xd87   :  { %2075 = vsyncpa [#allocation5], 1 }
 0xd88   :  { %2077 = vsyncpa [#allocation5 + $0x1], 1 }

</bundles_post_ra>
